<compile_context>
chip_gen: v6e
topology: v6e:2x2x1
jax: 0.10.0
libtpu: 0.0.40
codegen_flags: <defaults>
</compile_context>

<pallas_src>
import numpy as np
import jax
import jax.numpy as jnp
from jax import lax
from jax.experimental import pallas as pl
from jax.experimental.pallas import tpu as pltpu


def _make_kernel(T, SH, BHp, unroll):
    def kernel(emb_ref, shift_ref, wslot_ref, lslot_ref, rslot_ref,
               w_ref, b_ref, out_ref):
        # Loop-invariant values, hoisted out of the serial loop.
        slot_ids = lax.broadcasted_iota(jnp.int32, (SH, BHp), 0)
        bias = b_ref[...]                                   # (1, BHp)

        def body(t, stack):
            emb = emb_ref[t][None, :]        # (1, BHp) embedding at step t
            is_sh = shift_ref[t][None, :] > 0
            wslot = wslot_ref[t][None, :]    # write target slot (-1 => no-op)
            lslot = lslot_ref[t][None, :]    # left-child slot  (ptr - 2)
            rslot = rslot_ref[t][None, :]    # right-child slot (ptr - 1)

            # Children via masked sublane reductions (XLU); out-of-range slots
            # (< 0) never match -> contribute zeros, and are never consumed.
            l_child = jnp.sum(jnp.where(slot_ids == lslot, stack, 0.0),
                              axis=0, keepdims=True)        # (1, BHp)
            r_child = jnp.sum(jnp.where(slot_ids == rslot, stack, 0.0),
                              axis=0, keepdims=True)        # (1, BHp)

            # Single fused MXU push: [l | r] (1, 2BHp) @ block-diag W.
            lr = jnp.concatenate([l_child, r_child], axis=1)
            parent = jnp.tanh(
                jnp.dot(lr, w_ref[...], preferred_element_type=jnp.float32)
                + bias)                                      # (1, BHp)

            # Shift and reduce are mutually exclusive per batch column, so one
            # combined masked write updates the whole stack.
            new_vals = jnp.where(is_sh, emb, parent)         # (1, BHp)
            return jnp.where(slot_ids == wslot, new_vals, stack)

        stack0 = jnp.zeros((SH, BHp), jnp.float32)
        stack = lax.fori_loop(0, T, body, stack0, unroll=unroll)
        out_ref[...] = stack[0:1, :]   # bottom of stack == final tree encoding

    return kernel


def recursive_forward(tokens, emb_table, Wl, Wr, b,
                      padding_idx, paren_open, paren_close):
    """tokens: (T, B) int32 (time-major).  Returns (B, H) float32."""
    T, B = tokens.shape
    H = emb_table.shape[1]
    BH = B * H
    BHp = max(128, ((BH + 127) // 128) * 128)   # lane-dense width
    pad = BHp - BH
    SH = T + 1                                  # static stack-capacity bound
    f32 = jnp.float32

    # --- glue (plain JAX): masks, pointer trajectory, lane-dense layouts -----
    is_shift = ((tokens != padding_idx)
                & (tokens != paren_open)
                & (tokens != paren_close)).astype(jnp.int32)        # (T, B)
    is_reduce = (tokens == paren_close).astype(jnp.int32)           # (T, B)
    delta = is_shift - is_reduce
    ptr = jnp.concatenate(
        [jnp.zeros((1, B), jnp.int32),
         jnp.cumsum(delta, axis=0).astype(jnp.int32)[:-1]], axis=0)  # exclusive

    # Per-step slot targets, fully precomputed (keeps them off the serial path).
    wslot = jnp.where(is_shift > 0, ptr,
                      jnp.where(is_reduce > 0, ptr - 2, -1))         # (T, B)
    lslot = ptr - 2
    rslot = ptr - 1

    def to_lanes(x, fill):   # (T, B) -> (T, BHp): broadcast over each batch's lanes
        y = jnp.broadcast_to(x[:, :, None], (T, B, H)).reshape(T, BH)
        if pad:
            y = jnp.concatenate(
                [y, jnp.full((T, pad), fill, y.dtype)], axis=1)
        return y

    emb_flat = emb_table[tokens].astype(f32).reshape(T, BH)          # (T, BH)
    if pad:
        emb_flat = jnp.concatenate(
            [emb_flat, jnp.zeros((T, pad), f32)], axis=1)

    shift_l = to_lanes(is_shift, 0)
    wslot_l = to_lanes(wslot, -1)     # padded lanes never write
    lslot_l = to_lanes(lslot, -1)
    rslot_l = to_lanes(rslot, -1)

    # Fused block-diagonal compose weights (keeps the per-step matmul lane-dense).
    eye_b = jnp.eye(B, dtype=f32)
    wl_blk = jnp.kron(eye_b, Wl.astype(f32))                         # (BH, BH)
    wr_blk = jnp.kron(eye_b, Wr.astype(f32))

    def pad2(m):
        return jnp.pad(m, ((0, pad), (0, pad))) if pad else m

    w_big = jnp.concatenate([pad2(wl_blk), pad2(wr_blk)], axis=0)    # (2BHp, BHp)
    bias_flat = jnp.tile(b.reshape(1, H).astype(f32), (1, B))        # (1, BH)
    if pad:
        bias_flat = jnp.concatenate(
            [bias_flat, jnp.zeros((1, pad), f32)], axis=1)

    unroll = True if T <= 32 else 8
    kernel = _make_kernel(T, SH, BHp, unroll)

    grid_spec = pltpu.PrefetchScalarGridSpec(
        num_scalar_prefetch=0,
        grid=(1,),
        in_specs=[
            pl.BlockSpec((T, BHp), lambda i: (0, 0)),        # embeddings
            pl.BlockSpec((T, BHp), lambda i: (0, 0)),        # shift mask
            pl.BlockSpec((T, BHp), lambda i: (0, 0)),        # write slot
            pl.BlockSpec((T, BHp), lambda i: (0, 0)),        # left-child slot
            pl.BlockSpec((T, BHp), lambda i: (0, 0)),        # right-child slot
            pl.BlockSpec((2 * BHp, BHp), lambda i: (0, 0)),  # fused weights
            pl.BlockSpec((1, BHp), lambda i: (0, 0)),        # bias
        ],
        out_specs=pl.BlockSpec((1, BHp), lambda i: (0, 0)),
        scratch_shapes=[],
    )

    out_flat = pl.pallas_call(
        kernel,
        out_shape=jax.ShapeDtypeStruct((1, BHp), f32),
        grid_spec=grid_spec,
        compiler_params=pltpu.CompilerParams(
            dimension_semantics=("arbitrary",)),
    )(emb_flat, shift_l, wslot_l, lslot_l, rslot_l, w_big, bias_flat)
    return out_flat[:, :BH].reshape(B, H)


def reference_forward(tokens, emb_table, Wl, Wr, b,
                      padding_idx, paren_open, paren_close):
    """Pure numpy stack machine mirroring the PyTorch forward."""
    tokens = np.asarray(tokens)
    emb_table = np.asarray(emb_table)
    Wl = np.asarray(Wl); Wr = np.asarray(Wr); bb = np.asarray(b)[0]
    T, B = tokens.shape
    H = emb_table.shape[1]
    stack = np.zeros((B, T + 1, H), np.float32)
    ptr = np.zeros(B, np.int64)
    for t in range(T):
        for i in range(B):
            tok = int(tokens[t, i])
            if tok == padding_idx or tok == paren_open:
                continue
            if tok == paren_close:
                r = stack[i, ptr[i] - 1]
                l = stack[i, ptr[i] - 2]
                stack[i, ptr[i] - 2] = np.tanh(l @ Wl + r @ Wr + bb)
                ptr[i] -= 1
            else:
                stack[i, ptr[i]] = emb_table[tok]
                ptr[i] += 1
    return stack[:, 0]


if __name__ == "__main__":
    VOCAB = 16
    HIDDEN = 32
    PAREN_OPEN, PAREN_CLOSE = 0, 1
    PADDING_IDX = 2
    MAX_LEN, BATCH = 12, 4

    # Deterministic parameter init.
    key = jax.random.PRNGKey(0)
    k_emb, k_wl, k_wr, k_b = jax.random.split(key, 4)
    emb_table = jax.random.normal(k_emb, (VOCAB, HIDDEN), jnp.float32)
    Wl = 0.2 * jax.random.normal(k_wl, (HIDDEN, HIDDEN), jnp.float32)
    Wr = 0.2 * jax.random.normal(k_wr, (HIDDEN, HIDDEN), jnp.float32)
    b = 0.1 * jax.random.normal(k_b, (1, HIDDEN), jnp.float32)

    # Batch of balanced parenthesized expressions (time-major, padded).
    seqs = [
        [0, 0, 3, 4, 1, 0, 5, 6, 1, 1],          # ( ( a b ) ( c d ) )
        [0, 7, 8, 1],                             # ( a b )
        [0, 9, 0, 10, 11, 1, 1],                  # ( a ( b c ) )
        [0, 0, 0, 12, 13, 1, 14, 1, 15, 1],       # ( ( ( a b ) c ) d )
    ]
    tok_np = np.full((MAX_LEN, BATCH), PADDING_IDX, np.int32)
    for i, s in enumerate(seqs):
        tok_np[:len(s), i] = s
    tokens = jnp.asarray(tok_np)

    out = recursive_forward(tokens, emb_table, Wl, Wr, b,
                            PADDING_IDX, PAREN_OPEN, PAREN_CLOSE)
    out = jax.block_until_ready(out)

    ref = reference_forward(tok_np, emb_table, Wl, Wr, b,
                            PADDING_IDX, PAREN_OPEN, PAREN_CLOSE)
    np.testing.assert_allclose(np.asarray(out), ref, rtol=2e-2, atol=2e-2)

    print("KERNEL_OK")
</pallas_src>

<mosaic_0001>
module attributes {stable_mosaic.version = 11 : i64} {
  func.func @kernel(%arg0: i32, %arg1: memref<12x128xf32, #tpu.memory_space<vmem>>, %arg2: memref<12x128xi32, #tpu.memory_space<vmem>>, %arg3: memref<12x128xi32, #tpu.memory_space<vmem>>, %arg4: memref<12x128xi32, #tpu.memory_space<vmem>>, %arg5: memref<12x128xi32, #tpu.memory_space<vmem>>, %arg6: memref<256x128xf32, #tpu.memory_space<vmem>>, %arg7: memref<1x128xf32, #tpu.memory_space<vmem>>, %arg8: memref<1x128xf32, #tpu.memory_space<vmem>>) attributes {dimension_semantics = [#tpu.dimension_semantics<arbitrary>], iteration_bounds = array<i64: 1>, scalar_prefetch = 0 : i64, scratch_operands = 0 : i64, tpu.core_type = #tpu.core_type<tc>, window_params = [{pipeline_mode = #tpu.pipeline_mode<synchronous>, transform_indices = @transform_0, window_bounds = array<i64: 12, 128>}, {pipeline_mode = #tpu.pipeline_mode<synchronous>, transform_indices = @transform_1, window_bounds = array<i64: 12, 128>}, {pipeline_mode = #tpu.pipeline_mode<synchronous>, transform_indices = @transform_2, window_bounds = array<i64: 12, 128>}, {pipeline_mode = #tpu.pipeline_mode<synchronous>, transform_indices = @transform_3, window_bounds = array<i64: 12, 128>}, {pipeline_mode = #tpu.pipeline_mode<synchronous>, transform_indices = @transform_4, window_bounds = array<i64: 12, 128>}, {pipeline_mode = #tpu.pipeline_mode<synchronous>, transform_indices = @transform_5, window_bounds = array<i64: 256, 128>}, {pipeline_mode = #tpu.pipeline_mode<synchronous>, transform_indices = @transform_6, window_bounds = array<i64: 1, 128>}, {pipeline_mode = #tpu.pipeline_mode<synchronous>, transform_indices = @transform_7, window_bounds = array<i64: 1, 128>}]} {
    %0 = tpu.iota {dimensions = array<i32: 0>} : vector<13x128xi32>
    %c0 = arith.constant 0 : index
    %c0_0 = arith.constant 0 : index
    %1 = vector.load %arg7[%c0, %c0_0] : memref<1x128xf32, #tpu.memory_space<vmem>>, vector<1x128xf32>
    %cst = arith.constant 0.000000e+00 : f32
    %2 = vector.broadcast %cst : f32 to vector<13x128xf32>
    %c0_i32 = arith.constant 0 : i32
    %3 = arith.index_cast %c0_i32 : i32 to index
    %c0_1 = arith.constant 0 : index
    %4 = vector.load %arg1[%3, %c0_1] : memref<12x128xf32, #tpu.memory_space<vmem>>, vector<1x128xf32>
    %5 = vector.shape_cast %4 : vector<1x128xf32> to vector<128xf32>
    %6 = vector.shape_cast %5 : vector<128xf32> to vector<1x128xf32>
    %7 = arith.index_cast %c0_i32 : i32 to index
    %c0_2 = arith.constant 0 : index
    %8 = vector.load %arg2[%7, %c0_2] : memref<12x128xi32, #tpu.memory_space<vmem>>, vector<1x128xi32>
    %9 = vector.shape_cast %8 : vector<1x128xi32> to vector<128xi32>
    %10 = vector.shape_cast %9 : vector<128xi32> to vector<1x128xi32>
    %c0_i32_3 = arith.constant 0 : i32
    %11 = vector.broadcast %c0_i32_3 : i32 to vector<1x128xi32>
    %12 = arith.cmpi sgt, %10, %11 : vector<1x128xi32>
    %13 = arith.index_cast %c0_i32 : i32 to index
    %c0_4 = arith.constant 0 : index
    %14 = vector.load %arg3[%13, %c0_4] : memref<12x128xi32, #tpu.memory_space<vmem>>, vector<1x128xi32>
    %15 = vector.shape_cast %14 : vector<1x128xi32> to vector<128xi32>
    %16 = vector.shape_cast %15 : vector<128xi32> to vector<1x128xi32>
    %17 = arith.index_cast %c0_i32 : i32 to index
    %c0_5 = arith.constant 0 : index
    %18 = vector.load %arg4[%17, %c0_5] : memref<12x128xi32, #tpu.memory_space<vmem>>, vector<1x128xi32>
    %19 = vector.shape_cast %18 : vector<1x128xi32> to vector<128xi32>
    %20 = vector.shape_cast %19 : vector<128xi32> to vector<1x128xi32>
    %21 = arith.index_cast %c0_i32 : i32 to index
    %c0_6 = arith.constant 0 : index
    %22 = vector.load %arg5[%21, %c0_6] : memref<12x128xi32, #tpu.memory_space<vmem>>, vector<1x128xi32>
    %23 = vector.shape_cast %22 : vector<1x128xi32> to vector<128xi32>
    %24 = vector.shape_cast %23 : vector<128xi32> to vector<1x128xi32>
    %25 = vector.broadcast %20 : vector<1x128xi32> to vector<13x128xi32>
    %26 = arith.cmpi eq, %0, %25 : vector<13x128xi32>
    %cst_7 = arith.constant 0.000000e+00 : f32
    %27 = vector.broadcast %cst_7 : f32 to vector<13x128xf32>
    %28 = arith.select %26, %2, %27 : vector<13x128xi1>, vector<13x128xf32>
    %cst_8 = arith.constant dense<0.000000e+00> : vector<128xf32>
    %29 = vector.multi_reduction <add>, %28, %cst_8 [0] : vector<13x128xf32> to vector<128xf32>
    %30 = vector.shape_cast %29 : vector<128xf32> to vector<1x128xf32>
    %31 = vector.broadcast %24 : vector<1x128xi32> to vector<13x128xi32>
    %32 = arith.cmpi eq, %0, %31 : vector<13x128xi32>
    %cst_9 = arith.constant 0.000000e+00 : f32
    %33 = vector.broadcast %cst_9 : f32 to vector<13x128xf32>
    %34 = arith.select %32, %2, %33 : vector<13x128xi1>, vector<13x128xf32>
    %cst_10 = arith.constant dense<0.000000e+00> : vector<128xf32>
    %35 = vector.multi_reduction <add>, %34, %cst_10 [0] : vector<13x128xf32> to vector<128xf32>
    %36 = vector.shape_cast %35 : vector<128xf32> to vector<1x128xf32>
    %37 = tpu.concatenate %30, %36 in 1 : vector<1x128xf32>, vector<1x128xf32> -> vector<1x256xf32>
    %c0_11 = arith.constant 0 : index
    %c0_12 = arith.constant 0 : index
    %38 = vector.load %arg6[%c0_11, %c0_12] : memref<256x128xf32, #tpu.memory_space<vmem>>, vector<256x128xf32>
    %cst_13 = arith.constant dense<0.000000e+00> : vector<1x128xf32>
    %39 = tpu.matmul %37, %38, %cst_13 {dimension_numbers = #tpu.dot_dimension_numbers<[1], [0], [0], [1], [0, 0, 1, 1], [], []>} : vector<1x256xf32>, vector<256x128xf32>, vector<1x128xf32> -> vector<1x128xf32>
    %40 = arith.addf %39, %1 : vector<1x128xf32>
    %41 = math.tanh %40 : vector<1x128xf32>
    %42 = arith.select %12, %6, %41 : vector<1x128xi1>, vector<1x128xf32>
    %43 = vector.broadcast %16 : vector<1x128xi32> to vector<13x128xi32>
    %44 = arith.cmpi eq, %0, %43 : vector<13x128xi32>
    %45 = vector.shape_cast %42 : vector<1x128xf32> to vector<1x128xf32>
    %46 = vector.broadcast %45 : vector<1x128xf32> to vector<13x128xf32>
    %47 = arith.select %44, %46, %2 : vector<13x128xi1>, vector<13x128xf32>
    %c1_i32 = arith.constant 1 : i32
    %48 = arith.index_cast %c1_i32 : i32 to index
    %c0_14 = arith.constant 0 : index
    %49 = vector.load %arg1[%48, %c0_14] : memref<12x128xf32, #tpu.memory_space<vmem>>, vector<1x128xf32>
    %50 = vector.shape_cast %49 : vector<1x128xf32> to vector<128xf32>
    %51 = vector.shape_cast %50 : vector<128xf32> to vector<1x128xf32>
    %52 = arith.index_cast %c1_i32 : i32 to index
    %c0_15 = arith.constant 0 : index
    %53 = vector.load %arg2[%52, %c0_15] : memref<12x128xi32, #tpu.memory_space<vmem>>, vector<1x128xi32>
    %54 = vector.shape_cast %53 : vector<1x128xi32> to vector<128xi32>
    %55 = vector.shape_cast %54 : vector<128xi32> to vector<1x128xi32>
    %c0_i32_16 = arith.constant 0 : i32
    %56 = vector.broadcast %c0_i32_16 : i32 to vector<1x128xi32>
    %57 = arith.cmpi sgt, %55, %56 : vector<1x128xi32>
    %58 = arith.index_cast %c1_i32 : i32 to index
    %c0_17 = arith.constant 0 : index
    %59 = vector.load %arg3[%58, %c0_17] : memref<12x128xi32, #tpu.memory_space<vmem>>, vector<1x128xi32>
    %60 = vector.shape_cast %59 : vector<1x128xi32> to vector<128xi32>
    %61 = vector.shape_cast %60 : vector<128xi32> to vector<1x128xi32>
    %62 = arith.index_cast %c1_i32 : i32 to index
    %c0_18 = arith.constant 0 : index
    %63 = vector.load %arg4[%62, %c0_18] : memref<12x128xi32, #tpu.memory_space<vmem>>, vector<1x128xi32>
    %64 = vector.shape_cast %63 : vector<1x128xi32> to vector<128xi32>
    %65 = vector.shape_cast %64 : vector<128xi32> to vector<1x128xi32>
    %66 = arith.index_cast %c1_i32 : i32 to index
    %c0_19 = arith.constant 0 : index
    %67 = vector.load %arg5[%66, %c0_19] : memref<12x128xi32, #tpu.memory_space<vmem>>, vector<1x128xi32>
    %68 = vector.shape_cast %67 : vector<1x128xi32> to vector<128xi32>
    %69 = vector.shape_cast %68 : vector<128xi32> to vector<1x128xi32>
    %70 = vector.broadcast %65 : vector<1x128xi32> to vector<13x128xi32>
    %71 = arith.cmpi eq, %0, %70 : vector<13x128xi32>
    %cst_20 = arith.constant 0.000000e+00 : f32
    %72 = vector.broadcast %cst_20 : f32 to vector<13x128xf32>
    %73 = arith.select %71, %47, %72 : vector<13x128xi1>, vector<13x128xf32>
    %cst_21 = arith.constant dense<0.000000e+00> : vector<128xf32>
    %74 = vector.multi_reduction <add>, %73, %cst_21 [0] : vector<13x128xf32> to vector<128xf32>
    %75 = vector.shape_cast %74 : vector<128xf32> to vector<1x128xf32>
    %76 = vector.broadcast %69 : vector<1x128xi32> to vector<13x128xi32>
    %77 = arith.cmpi eq, %0, %76 : vector<13x128xi32>
    %cst_22 = arith.constant 0.000000e+00 : f32
    %78 = vector.broadcast %cst_22 : f32 to vector<13x128xf32>
    %79 = arith.select %77, %47, %78 : vector<13x128xi1>, vector<13x128xf32>
    %cst_23 = arith.constant dense<0.000000e+00> : vector<128xf32>
    %80 = vector.multi_reduction <add>, %79, %cst_23 [0] : vector<13x128xf32> to vector<128xf32>
    %81 = vector.shape_cast %80 : vector<128xf32> to vector<1x128xf32>
    %82 = tpu.concatenate %75, %81 in 1 : vector<1x128xf32>, vector<1x128xf32> -> vector<1x256xf32>
    %c0_24 = arith.constant 0 : index
    %c0_25 = arith.constant 0 : index
    %83 = vector.load %arg6[%c0_24, %c0_25] : memref<256x128xf32, #tpu.memory_space<vmem>>, vector<256x128xf32>
    %cst_26 = arith.constant dense<0.000000e+00> : vector<1x128xf32>
    %84 = tpu.matmul %82, %83, %cst_26 {dimension_numbers = #tpu.dot_dimension_numbers<[1], [0], [0], [1], [0, 0, 1, 1], [], []>} : vector<1x256xf32>, vector<256x128xf32>, vector<1x128xf32> -> vector<1x128xf32>
    %85 = arith.addf %84, %1 : vector<1x128xf32>
    %86 = math.tanh %85 : vector<1x128xf32>
    %87 = arith.select %57, %51, %86 : vector<1x128xi1>, vector<1x128xf32>
    %88 = vector.broadcast %61 : vector<1x128xi32> to vector<13x128xi32>
    %89 = arith.cmpi eq, %0, %88 : vector<13x128xi32>
    %90 = vector.shape_cast %87 : vector<1x128xf32> to vector<1x128xf32>
    %91 = vector.broadcast %90 : vector<1x128xf32> to vector<13x128xf32>
    %92 = arith.select %89, %91, %47 : vector<13x128xi1>, vector<13x128xf32>
    %c2_i32 = arith.constant 2 : i32
    %93 = arith.index_cast %c2_i32 : i32 to index
    %c0_27 = arith.constant 0 : index
    %94 = vector.load %arg1[%93, %c0_27] : memref<12x128xf32, #tpu.memory_space<vmem>>, vector<1x128xf32>
    %95 = vector.shape_cast %94 : vector<1x128xf32> to vector<128xf32>
    %96 = vector.shape_cast %95 : vector<128xf32> to vector<1x128xf32>
    %97 = arith.index_cast %c2_i32 : i32 to index
    %c0_28 = arith.constant 0 : index
    %98 = vector.load %arg2[%97, %c0_28] : memref<12x128xi32, #tpu.memory_space<vmem>>, vector<1x128xi32>
    %99 = vector.shape_cast %98 : vector<1x128xi32> to vector<128xi32>
    %100 = vector.shape_cast %99 : vector<128xi32> to vector<1x128xi32>
    %c0_i32_29 = arith.constant 0 : i32
    %101 = vector.broadcast %c0_i32_29 : i32 to vector<1x128xi32>
    %102 = arith.cmpi sgt, %100, %101 : vector<1x128xi32>
    %103 = arith.index_cast %c2_i32 : i32 to index
    %c0_30 = arith.constant 0 : index
    %104 = vector.load %arg3[%103, %c0_30] : memref<12x128xi32, #tpu.memory_space<vmem>>, vector<1x128xi32>
    %105 = vector.shape_cast %104 : vector<1x128xi32> to vector<128xi32>
    %106 = vector.shape_cast %105 : vector<128xi32> to vector<1x128xi32>
    %107 = arith.index_cast %c2_i32 : i32 to index
    %c0_31 = arith.constant 0 : index
    %108 = vector.load %arg4[%107, %c0_31] : memref<12x128xi32, #tpu.memory_space<vmem>>, vector<1x128xi32>
    %109 = vector.shape_cast %108 : vector<1x128xi32> to vector<128xi32>
    %110 = vector.shape_cast %109 : vector<128xi32> to vector<1x128xi32>
    %111 = arith.index_cast %c2_i32 : i32 to index
    %c0_32 = arith.constant 0 : index
    %112 = vector.load %arg5[%111, %c0_32] : memref<12x128xi32, #tpu.memory_space<vmem>>, vector<1x128xi32>
    %113 = vector.shape_cast %112 : vector<1x128xi32> to vector<128xi32>
    %114 = vector.shape_cast %113 : vector<128xi32> to vector<1x128xi32>
    %115 = vector.broadcast %110 : vector<1x128xi32> to vector<13x128xi32>
    %116 = arith.cmpi eq, %0, %115 : vector<13x128xi32>
    %cst_33 = arith.constant 0.000000e+00 : f32
    %117 = vector.broadcast %cst_33 : f32 to vector<13x128xf32>
    %118 = arith.select %116, %92, %117 : vector<13x128xi1>, vector<13x128xf32>
    %cst_34 = arith.constant dense<0.000000e+00> : vector<128xf32>
    %119 = vector.multi_reduction <add>, %118, %cst_34 [0] : vector<13x128xf32> to vector<128xf32>
    %120 = vector.shape_cast %119 : vector<128xf32> to vector<1x128xf32>
    %121 = vector.broadcast %114 : vector<1x128xi32> to vector<13x128xi32>
    %122 = arith.cmpi eq, %0, %121 : vector<13x128xi32>
    %cst_35 = arith.constant 0.000000e+00 : f32
    %123 = vector.broadcast %cst_35 : f32 to vector<13x128xf32>
    %124 = arith.select %122, %92, %123 : vector<13x128xi1>, vector<13x128xf32>
    %cst_36 = arith.constant dense<0.000000e+00> : vector<128xf32>
    %125 = vector.multi_reduction <add>, %124, %cst_36 [0] : vector<13x128xf32> to vector<128xf32>
    %126 = vector.shape_cast %125 : vector<128xf32> to vector<1x128xf32>
    %127 = tpu.concatenate %120, %126 in 1 : vector<1x128xf32>, vector<1x128xf32> -> vector<1x256xf32>
    %c0_37 = arith.constant 0 : index
    %c0_38 = arith.constant 0 : index
    %128 = vector.load %arg6[%c0_37, %c0_38] : memref<256x128xf32, #tpu.memory_space<vmem>>, vector<256x128xf32>
    %cst_39 = arith.constant dense<0.000000e+00> : vector<1x128xf32>
    %129 = tpu.matmul %127, %128, %cst_39 {dimension_numbers = #tpu.dot_dimension_numbers<[1], [0], [0], [1], [0, 0, 1, 1], [], []>} : vector<1x256xf32>, vector<256x128xf32>, vector<1x128xf32> -> vector<1x128xf32>
    %130 = arith.addf %129, %1 : vector<1x128xf32>
    %131 = math.tanh %130 : vector<1x128xf32>
    %132 = arith.select %102, %96, %131 : vector<1x128xi1>, vector<1x128xf32>
    %133 = vector.broadcast %106 : vector<1x128xi32> to vector<13x128xi32>
    %134 = arith.cmpi eq, %0, %133 : vector<13x128xi32>
    %135 = vector.shape_cast %132 : vector<1x128xf32> to vector<1x128xf32>
    %136 = vector.broadcast %135 : vector<1x128xf32> to vector<13x128xf32>
    %137 = arith.select %134, %136, %92 : vector<13x128xi1>, vector<13x128xf32>
    %c3_i32 = arith.constant 3 : i32
    %138 = arith.index_cast %c3_i32 : i32 to index
    %c0_40 = arith.constant 0 : index
    %139 = vector.load %arg1[%138, %c0_40] : memref<12x128xf32, #tpu.memory_space<vmem>>, vector<1x128xf32>
    %140 = vector.shape_cast %139 : vector<1x128xf32> to vector<128xf32>
    %141 = vector.shape_cast %140 : vector<128xf32> to vector<1x128xf32>
    %142 = arith.index_cast %c3_i32 : i32 to index
    %c0_41 = arith.constant 0 : index
    %143 = vector.load %arg2[%142, %c0_41] : memref<12x128xi32, #tpu.memory_space<vmem>>, vector<1x128xi32>
    %144 = vector.shape_cast %143 : vector<1x128xi32> to vector<128xi32>
    %145 = vector.shape_cast %144 : vector<128xi32> to vector<1x128xi32>
    %c0_i32_42 = arith.constant 0 : i32
    %146 = vector.broadcast %c0_i32_42 : i32 to vector<1x128xi32>
    %147 = arith.cmpi sgt, %145, %146 : vector<1x128xi32>
    %148 = arith.index_cast %c3_i32 : i32 to index
    %c0_43 = arith.constant 0 : index
    %149 = vector.load %arg3[%148, %c0_43] : memref<12x128xi32, #tpu.memory_space<vmem>>, vector<1x128xi32>
    %150 = vector.shape_cast %149 : vector<1x128xi32> to vector<128xi32>
    %151 = vector.shape_cast %150 : vector<128xi32> to vector<1x128xi32>
    %152 = arith.index_cast %c3_i32 : i32 to index
    %c0_44 = arith.constant 0 : index
    %153 = vector.load %arg4[%152, %c0_44] : memref<12x128xi32, #tpu.memory_space<vmem>>, vector<1x128xi32>
    %154 = vector.shape_cast %153 : vector<1x128xi32> to vector<128xi32>
    %155 = vector.shape_cast %154 : vector<128xi32> to vector<1x128xi32>
    %156 = arith.index_cast %c3_i32 : i32 to index
    %c0_45 = arith.constant 0 : index
    %157 = vector.load %arg5[%156, %c0_45] : memref<12x128xi32, #tpu.memory_space<vmem>>, vector<1x128xi32>
    %158 = vector.shape_cast %157 : vector<1x128xi32> to vector<128xi32>
    %159 = vector.shape_cast %158 : vector<128xi32> to vector<1x128xi32>
    %160 = vector.broadcast %155 : vector<1x128xi32> to vector<13x128xi32>
    %161 = arith.cmpi eq, %0, %160 : vector<13x128xi32>
    %cst_46 = arith.constant 0.000000e+00 : f32
    %162 = vector.broadcast %cst_46 : f32 to vector<13x128xf32>
    %163 = arith.select %161, %137, %162 : vector<13x128xi1>, vector<13x128xf32>
    %cst_47 = arith.constant dense<0.000000e+00> : vector<128xf32>
    %164 = vector.multi_reduction <add>, %163, %cst_47 [0] : vector<13x128xf32> to vector<128xf32>
    %165 = vector.shape_cast %164 : vector<128xf32> to vector<1x128xf32>
    %166 = vector.broadcast %159 : vector<1x128xi32> to vector<13x128xi32>
    %167 = arith.cmpi eq, %0, %166 : vector<13x128xi32>
    %cst_48 = arith.constant 0.000000e+00 : f32
    %168 = vector.broadcast %cst_48 : f32 to vector<13x128xf32>
    %169 = arith.select %167, %137, %168 : vector<13x128xi1>, vector<13x128xf32>
    %cst_49 = arith.constant dense<0.000000e+00> : vector<128xf32>
    %170 = vector.multi_reduction <add>, %169, %cst_49 [0] : vector<13x128xf32> to vector<128xf32>
    %171 = vector.shape_cast %170 : vector<128xf32> to vector<1x128xf32>
    %172 = tpu.concatenate %165, %171 in 1 : vector<1x128xf32>, vector<1x128xf32> -> vector<1x256xf32>
    %c0_50 = arith.constant 0 : index
    %c0_51 = arith.constant 0 : index
    %173 = vector.load %arg6[%c0_50, %c0_51] : memref<256x128xf32, #tpu.memory_space<vmem>>, vector<256x128xf32>
    %cst_52 = arith.constant dense<0.000000e+00> : vector<1x128xf32>
    %174 = tpu.matmul %172, %173, %cst_52 {dimension_numbers = #tpu.dot_dimension_numbers<[1], [0], [0], [1], [0, 0, 1, 1], [], []>} : vector<1x256xf32>, vector<256x128xf32>, vector<1x128xf32> -> vector<1x128xf32>
    %175 = arith.addf %174, %1 : vector<1x128xf32>
    %176 = math.tanh %175 : vector<1x128xf32>
    %177 = arith.select %147, %141, %176 : vector<1x128xi1>, vector<1x128xf32>
    %178 = vector.broadcast %151 : vector<1x128xi32> to vector<13x128xi32>
    %179 = arith.cmpi eq, %0, %178 : vector<13x128xi32>
    %180 = vector.shape_cast %177 : vector<1x128xf32> to vector<1x128xf32>
    %181 = vector.broadcast %180 : vector<1x128xf32> to vector<13x128xf32>
    %182 = arith.select %179, %181, %137 : vector<13x128xi1>, vector<13x128xf32>
    %c4_i32 = arith.constant 4 : i32
    %183 = arith.index_cast %c4_i32 : i32 to index
    %c0_53 = arith.constant 0 : index
    %184 = vector.load %arg1[%183, %c0_53] : memref<12x128xf32, #tpu.memory_space<vmem>>, vector<1x128xf32>
    %185 = vector.shape_cast %184 : vector<1x128xf32> to vector<128xf32>
    %186 = vector.shape_cast %185 : vector<128xf32> to vector<1x128xf32>
    %187 = arith.index_cast %c4_i32 : i32 to index
    %c0_54 = arith.constant 0 : index
    %188 = vector.load %arg2[%187, %c0_54] : memref<12x128xi32, #tpu.memory_space<vmem>>, vector<1x128xi32>
    %189 = vector.shape_cast %188 : vector<1x128xi32> to vector<128xi32>
    %190 = vector.shape_cast %189 : vector<128xi32> to vector<1x128xi32>
    %c0_i32_55 = arith.constant 0 : i32
    %191 = vector.broadcast %c0_i32_55 : i32 to vector<1x128xi32>
    %192 = arith.cmpi sgt, %190, %191 : vector<1x128xi32>
    %193 = arith.index_cast %c4_i32 : i32 to index
    %c0_56 = arith.constant 0 : index
    %194 = vector.load %arg3[%193, %c0_56] : memref<12x128xi32, #tpu.memory_space<vmem>>, vector<1x128xi32>
    %195 = vector.shape_cast %194 : vector<1x128xi32> to vector<128xi32>
    %196 = vector.shape_cast %195 : vector<128xi32> to vector<1x128xi32>
    %197 = arith.index_cast %c4_i32 : i32 to index
    %c0_57 = arith.constant 0 : index
    %198 = vector.load %arg4[%197, %c0_57] : memref<12x128xi32, #tpu.memory_space<vmem>>, vector<1x128xi32>
    %199 = vector.shape_cast %198 : vector<1x128xi32> to vector<128xi32>
    %200 = vector.shape_cast %199 : vector<128xi32> to vector<1x128xi32>
    %201 = arith.index_cast %c4_i32 : i32 to index
    %c0_58 = arith.constant 0 : index
    %202 = vector.load %arg5[%201, %c0_58] : memref<12x128xi32, #tpu.memory_space<vmem>>, vector<1x128xi32>
    %203 = vector.shape_cast %202 : vector<1x128xi32> to vector<128xi32>
    %204 = vector.shape_cast %203 : vector<128xi32> to vector<1x128xi32>
    %205 = vector.broadcast %200 : vector<1x128xi32> to vector<13x128xi32>
    %206 = arith.cmpi eq, %0, %205 : vector<13x128xi32>
    %cst_59 = arith.constant 0.000000e+00 : f32
    %207 = vector.broadcast %cst_59 : f32 to vector<13x128xf32>
    %208 = arith.select %206, %182, %207 : vector<13x128xi1>, vector<13x128xf32>
    %cst_60 = arith.constant dense<0.000000e+00> : vector<128xf32>
    %209 = vector.multi_reduction <add>, %208, %cst_60 [0] : vector<13x128xf32> to vector<128xf32>
    %210 = vector.shape_cast %209 : vector<128xf32> to vector<1x128xf32>
    %211 = vector.broadcast %204 : vector<1x128xi32> to vector<13x128xi32>
    %212 = arith.cmpi eq, %0, %211 : vector<13x128xi32>
    %cst_61 = arith.constant 0.000000e+00 : f32
    %213 = vector.broadcast %cst_61 : f32 to vector<13x128xf32>
    %214 = arith.select %212, %182, %213 : vector<13x128xi1>, vector<13x128xf32>
    %cst_62 = arith.constant dense<0.000000e+00> : vector<128xf32>
    %215 = vector.multi_reduction <add>, %214, %cst_62 [0] : vector<13x128xf32> to vector<128xf32>
    %216 = vector.shape_cast %215 : vector<128xf32> to vector<1x128xf32>
    %217 = tpu.concatenate %210, %216 in 1 : vector<1x128xf32>, vector<1x128xf32> -> vector<1x256xf32>
    %c0_63 = arith.constant 0 : index
    %c0_64 = arith.constant 0 : index
    %218 = vector.load %arg6[%c0_63, %c0_64] : memref<256x128xf32, #tpu.memory_space<vmem>>, vector<256x128xf32>
    %cst_65 = arith.constant dense<0.000000e+00> : vector<1x128xf32>
    %219 = tpu.matmul %217, %218, %cst_65 {dimension_numbers = #tpu.dot_dimension_numbers<[1], [0], [0], [1], [0, 0, 1, 1], [], []>} : vector<1x256xf32>, vector<256x128xf32>, vector<1x128xf32> -> vector<1x128xf32>
    %220 = arith.addf %219, %1 : vector<1x128xf32>
    %221 = math.tanh %220 : vector<1x128xf32>
    %222 = arith.select %192, %186, %221 : vector<1x128xi1>, vector<1x128xf32>
    %223 = vector.broadcast %196 : vector<1x128xi32> to vector<13x128xi32>
    %224 = arith.cmpi eq, %0, %223 : vector<13x128xi32>
    %225 = vector.shape_cast %222 : vector<1x128xf32> to vector<1x128xf32>
    %226 = vector.broadcast %225 : vector<1x128xf32> to vector<13x128xf32>
    %227 = arith.select %224, %226, %182 : vector<13x128xi1>, vector<13x128xf32>
    %c5_i32 = arith.constant 5 : i32
    %228 = arith.index_cast %c5_i32 : i32 to index
    %c0_66 = arith.constant 0 : index
    %229 = vector.load %arg1[%228, %c0_66] : memref<12x128xf32, #tpu.memory_space<vmem>>, vector<1x128xf32>
    %230 = vector.shape_cast %229 : vector<1x128xf32> to vector<128xf32>
    %231 = vector.shape_cast %230 : vector<128xf32> to vector<1x128xf32>
    %232 = arith.index_cast %c5_i32 : i32 to index
    %c0_67 = arith.constant 0 : index
    %233 = vector.load %arg2[%232, %c0_67] : memref<12x128xi32, #tpu.memory_space<vmem>>, vector<1x128xi32>
    %234 = vector.shape_cast %233 : vector<1x128xi32> to vector<128xi32>
    %235 = vector.shape_cast %234 : vector<128xi32> to vector<1x128xi32>
    %c0_i32_68 = arith.constant 0 : i32
    %236 = vector.broadcast %c0_i32_68 : i32 to vector<1x128xi32>
    %237 = arith.cmpi sgt, %235, %236 : vector<1x128xi32>
    %238 = arith.index_cast %c5_i32 : i32 to index
    %c0_69 = arith.constant 0 : index
    %239 = vector.load %arg3[%238, %c0_69] : memref<12x128xi32, #tpu.memory_space<vmem>>, vector<1x128xi32>
    %240 = vector.shape_cast %239 : vector<1x128xi32> to vector<128xi32>
    %241 = vector.shape_cast %240 : vector<128xi32> to vector<1x128xi32>
    %242 = arith.index_cast %c5_i32 : i32 to index
    %c0_70 = arith.constant 0 : index
    %243 = vector.load %arg4[%242, %c0_70] : memref<12x128xi32, #tpu.memory_space<vmem>>, vector<1x128xi32>
    %244 = vector.shape_cast %243 : vector<1x128xi32> to vector<128xi32>
    %245 = vector.shape_cast %244 : vector<128xi32> to vector<1x128xi32>
    %246 = arith.index_cast %c5_i32 : i32 to index
    %c0_71 = arith.constant 0 : index
    %247 = vector.load %arg5[%246, %c0_71] : memref<12x128xi32, #tpu.memory_space<vmem>>, vector<1x128xi32>
    %248 = vector.shape_cast %247 : vector<1x128xi32> to vector<128xi32>
    %249 = vector.shape_cast %248 : vector<128xi32> to vector<1x128xi32>
    %250 = vector.broadcast %245 : vector<1x128xi32> to vector<13x128xi32>
    %251 = arith.cmpi eq, %0, %250 : vector<13x128xi32>
    %cst_72 = arith.constant 0.000000e+00 : f32
    %252 = vector.broadcast %cst_72 : f32 to vector<13x128xf32>
    %253 = arith.select %251, %227, %252 : vector<13x128xi1>, vector<13x128xf32>
    %cst_73 = arith.constant dense<0.000000e+00> : vector<128xf32>
    %254 = vector.multi_reduction <add>, %253, %cst_73 [0] : vector<13x128xf32> to vector<128xf32>
    %255 = vector.shape_cast %254 : vector<128xf32> to vector<1x128xf32>
    %256 = vector.broadcast %249 : vector<1x128xi32> to vector<13x128xi32>
    %257 = arith.cmpi eq, %0, %256 : vector<13x128xi32>
    %cst_74 = arith.constant 0.000000e+00 : f32
    %258 = vector.broadcast %cst_74 : f32 to vector<13x128xf32>
    %259 = arith.select %257, %227, %258 : vector<13x128xi1>, vector<13x128xf32>
    %cst_75 = arith.constant dense<0.000000e+00> : vector<128xf32>
    %260 = vector.multi_reduction <add>, %259, %cst_75 [0] : vector<13x128xf32> to vector<128xf32>
    %261 = vector.shape_cast %260 : vector<128xf32> to vector<1x128xf32>
    %262 = tpu.concatenate %255, %261 in 1 : vector<1x128xf32>, vector<1x128xf32> -> vector<1x256xf32>
    %c0_76 = arith.constant 0 : index
    %c0_77 = arith.constant 0 : index
    %263 = vector.load %arg6[%c0_76, %c0_77] : memref<256x128xf32, #tpu.memory_space<vmem>>, vector<256x128xf32>
    %cst_78 = arith.constant dense<0.000000e+00> : vector<1x128xf32>
    %264 = tpu.matmul %262, %263, %cst_78 {dimension_numbers = #tpu.dot_dimension_numbers<[1], [0], [0], [1], [0, 0, 1, 1], [], []>} : vector<1x256xf32>, vector<256x128xf32>, vector<1x128xf32> -> vector<1x128xf32>
    %265 = arith.addf %264, %1 : vector<1x128xf32>
    %266 = math.tanh %265 : vector<1x128xf32>
    %267 = arith.select %237, %231, %266 : vector<1x128xi1>, vector<1x128xf32>
    %268 = vector.broadcast %241 : vector<1x128xi32> to vector<13x128xi32>
    %269 = arith.cmpi eq, %0, %268 : vector<13x128xi32>
    %270 = vector.shape_cast %267 : vector<1x128xf32> to vector<1x128xf32>
    %271 = vector.broadcast %270 : vector<1x128xf32> to vector<13x128xf32>
    %272 = arith.select %269, %271, %227 : vector<13x128xi1>, vector<13x128xf32>
    %c6_i32 = arith.constant 6 : i32
    %273 = arith.index_cast %c6_i32 : i32 to index
    %c0_79 = arith.constant 0 : index
    %274 = vector.load %arg1[%273, %c0_79] : memref<12x128xf32, #tpu.memory_space<vmem>>, vector<1x128xf32>
    %275 = vector.shape_cast %274 : vector<1x128xf32> to vector<128xf32>
    %276 = vector.shape_cast %275 : vector<128xf32> to vector<1x128xf32>
    %277 = arith.index_cast %c6_i32 : i32 to index
    %c0_80 = arith.constant 0 : index
    %278 = vector.load %arg2[%277, %c0_80] : memref<12x128xi32, #tpu.memory_space<vmem>>, vector<1x128xi32>
    %279 = vector.shape_cast %278 : vector<1x128xi32> to vector<128xi32>
    %280 = vector.shape_cast %279 : vector<128xi32> to vector<1x128xi32>
    %c0_i32_81 = arith.constant 0 : i32
    %281 = vector.broadcast %c0_i32_81 : i32 to vector<1x128xi32>
    %282 = arith.cmpi sgt, %280, %281 : vector<1x128xi32>
    %283 = arith.index_cast %c6_i32 : i32 to index
    %c0_82 = arith.constant 0 : index
    %284 = vector.load %arg3[%283, %c0_82] : memref<12x128xi32, #tpu.memory_space<vmem>>, vector<1x128xi32>
    %285 = vector.shape_cast %284 : vector<1x128xi32> to vector<128xi32>
    %286 = vector.shape_cast %285 : vector<128xi32> to vector<1x128xi32>
    %287 = arith.index_cast %c6_i32 : i32 to index
    %c0_83 = arith.constant 0 : index
    %288 = vector.load %arg4[%287, %c0_83] : memref<12x128xi32, #tpu.memory_space<vmem>>, vector<1x128xi32>
    %289 = vector.shape_cast %288 : vector<1x128xi32> to vector<128xi32>
    %290 = vector.shape_cast %289 : vector<128xi32> to vector<1x128xi32>
    %291 = arith.index_cast %c6_i32 : i32 to index
    %c0_84 = arith.constant 0 : index
    %292 = vector.load %arg5[%291, %c0_84] : memref<12x128xi32, #tpu.memory_space<vmem>>, vector<1x128xi32>
    %293 = vector.shape_cast %292 : vector<1x128xi32> to vector<128xi32>
    %294 = vector.shape_cast %293 : vector<128xi32> to vector<1x128xi32>
    %295 = vector.broadcast %290 : vector<1x128xi32> to vector<13x128xi32>
    %296 = arith.cmpi eq, %0, %295 : vector<13x128xi32>
    %cst_85 = arith.constant 0.000000e+00 : f32
    %297 = vector.broadcast %cst_85 : f32 to vector<13x128xf32>
    %298 = arith.select %296, %272, %297 : vector<13x128xi1>, vector<13x128xf32>
    %cst_86 = arith.constant dense<0.000000e+00> : vector<128xf32>
    %299 = vector.multi_reduction <add>, %298, %cst_86 [0] : vector<13x128xf32> to vector<128xf32>
    %300 = vector.shape_cast %299 : vector<128xf32> to vector<1x128xf32>
    %301 = vector.broadcast %294 : vector<1x128xi32> to vector<13x128xi32>
    %302 = arith.cmpi eq, %0, %301 : vector<13x128xi32>
    %cst_87 = arith.constant 0.000000e+00 : f32
    %303 = vector.broadcast %cst_87 : f32 to vector<13x128xf32>
    %304 = arith.select %302, %272, %303 : vector<13x128xi1>, vector<13x128xf32>
    %cst_88 = arith.constant dense<0.000000e+00> : vector<128xf32>
    %305 = vector.multi_reduction <add>, %304, %cst_88 [0] : vector<13x128xf32> to vector<128xf32>
    %306 = vector.shape_cast %305 : vector<128xf32> to vector<1x128xf32>
    %307 = tpu.concatenate %300, %306 in 1 : vector<1x128xf32>, vector<1x128xf32> -> vector<1x256xf32>
    %c0_89 = arith.constant 0 : index
    %c0_90 = arith.constant 0 : index
    %308 = vector.load %arg6[%c0_89, %c0_90] : memref<256x128xf32, #tpu.memory_space<vmem>>, vector<256x128xf32>
    %cst_91 = arith.constant dense<0.000000e+00> : vector<1x128xf32>
    %309 = tpu.matmul %307, %308, %cst_91 {dimension_numbers = #tpu.dot_dimension_numbers<[1], [0], [0], [1], [0, 0, 1, 1], [], []>} : vector<1x256xf32>, vector<256x128xf32>, vector<1x128xf32> -> vector<1x128xf32>
    %310 = arith.addf %309, %1 : vector<1x128xf32>
    %311 = math.tanh %310 : vector<1x128xf32>
    %312 = arith.select %282, %276, %311 : vector<1x128xi1>, vector<1x128xf32>
    %313 = vector.broadcast %286 : vector<1x128xi32> to vector<13x128xi32>
    %314 = arith.cmpi eq, %0, %313 : vector<13x128xi32>
    %315 = vector.shape_cast %312 : vector<1x128xf32> to vector<1x128xf32>
    %316 = vector.broadcast %315 : vector<1x128xf32> to vector<13x128xf32>
    %317 = arith.select %314, %316, %272 : vector<13x128xi1>, vector<13x128xf32>
    %c7_i32 = arith.constant 7 : i32
    %318 = arith.index_cast %c7_i32 : i32 to index
    %c0_92 = arith.constant 0 : index
    %319 = vector.load %arg1[%318, %c0_92] : memref<12x128xf32, #tpu.memory_space<vmem>>, vector<1x128xf32>
    %320 = vector.shape_cast %319 : vector<1x128xf32> to vector<128xf32>
    %321 = vector.shape_cast %320 : vector<128xf32> to vector<1x128xf32>
    %322 = arith.index_cast %c7_i32 : i32 to index
    %c0_93 = arith.constant 0 : index
    %323 = vector.load %arg2[%322, %c0_93] : memref<12x128xi32, #tpu.memory_space<vmem>>, vector<1x128xi32>
    %324 = vector.shape_cast %323 : vector<1x128xi32> to vector<128xi32>
    %325 = vector.shape_cast %324 : vector<128xi32> to vector<1x128xi32>
    %c0_i32_94 = arith.constant 0 : i32
    %326 = vector.broadcast %c0_i32_94 : i32 to vector<1x128xi32>
    %327 = arith.cmpi sgt, %325, %326 : vector<1x128xi32>
    %328 = arith.index_cast %c7_i32 : i32 to index
    %c0_95 = arith.constant 0 : index
    %329 = vector.load %arg3[%328, %c0_95] : memref<12x128xi32, #tpu.memory_space<vmem>>, vector<1x128xi32>
    %330 = vector.shape_cast %329 : vector<1x128xi32> to vector<128xi32>
    %331 = vector.shape_cast %330 : vector<128xi32> to vector<1x128xi32>
    %332 = arith.index_cast %c7_i32 : i32 to index
    %c0_96 = arith.constant 0 : index
    %333 = vector.load %arg4[%332, %c0_96] : memref<12x128xi32, #tpu.memory_space<vmem>>, vector<1x128xi32>
    %334 = vector.shape_cast %333 : vector<1x128xi32> to vector<128xi32>
    %335 = vector.shape_cast %334 : vector<128xi32> to vector<1x128xi32>
    %336 = arith.index_cast %c7_i32 : i32 to index
    %c0_97 = arith.constant 0 : index
    %337 = vector.load %arg5[%336, %c0_97] : memref<12x128xi32, #tpu.memory_space<vmem>>, vector<1x128xi32>
    %338 = vector.shape_cast %337 : vector<1x128xi32> to vector<128xi32>
    %339 = vector.shape_cast %338 : vector<128xi32> to vector<1x128xi32>
    %340 = vector.broadcast %335 : vector<1x128xi32> to vector<13x128xi32>
    %341 = arith.cmpi eq, %0, %340 : vector<13x128xi32>
    %cst_98 = arith.constant 0.000000e+00 : f32
    %342 = vector.broadcast %cst_98 : f32 to vector<13x128xf32>
    %343 = arith.select %341, %317, %342 : vector<13x128xi1>, vector<13x128xf32>
    %cst_99 = arith.constant dense<0.000000e+00> : vector<128xf32>
    %344 = vector.multi_reduction <add>, %343, %cst_99 [0] : vector<13x128xf32> to vector<128xf32>
    %345 = vector.shape_cast %344 : vector<128xf32> to vector<1x128xf32>
    %346 = vector.broadcast %339 : vector<1x128xi32> to vector<13x128xi32>
    %347 = arith.cmpi eq, %0, %346 : vector<13x128xi32>
    %cst_100 = arith.constant 0.000000e+00 : f32
    %348 = vector.broadcast %cst_100 : f32 to vector<13x128xf32>
    %349 = arith.select %347, %317, %348 : vector<13x128xi1>, vector<13x128xf32>
    %cst_101 = arith.constant dense<0.000000e+00> : vector<128xf32>
    %350 = vector.multi_reduction <add>, %349, %cst_101 [0] : vector<13x128xf32> to vector<128xf32>
    %351 = vector.shape_cast %350 : vector<128xf32> to vector<1x128xf32>
    %352 = tpu.concatenate %345, %351 in 1 : vector<1x128xf32>, vector<1x128xf32> -> vector<1x256xf32>
    %c0_102 = arith.constant 0 : index
    %c0_103 = arith.constant 0 : index
    %353 = vector.load %arg6[%c0_102, %c0_103] : memref<256x128xf32, #tpu.memory_space<vmem>>, vector<256x128xf32>
    %cst_104 = arith.constant dense<0.000000e+00> : vector<1x128xf32>
    %354 = tpu.matmul %352, %353, %cst_104 {dimension_numbers = #tpu.dot_dimension_numbers<[1], [0], [0], [1], [0, 0, 1, 1], [], []>} : vector<1x256xf32>, vector<256x128xf32>, vector<1x128xf32> -> vector<1x128xf32>
    %355 = arith.addf %354, %1 : vector<1x128xf32>
    %356 = math.tanh %355 : vector<1x128xf32>
    %357 = arith.select %327, %321, %356 : vector<1x128xi1>, vector<1x128xf32>
    %358 = vector.broadcast %331 : vector<1x128xi32> to vector<13x128xi32>
    %359 = arith.cmpi eq, %0, %358 : vector<13x128xi32>
    %360 = vector.shape_cast %357 : vector<1x128xf32> to vector<1x128xf32>
    %361 = vector.broadcast %360 : vector<1x128xf32> to vector<13x128xf32>
    %362 = arith.select %359, %361, %317 : vector<13x128xi1>, vector<13x128xf32>
    %c8_i32 = arith.constant 8 : i32
    %363 = arith.index_cast %c8_i32 : i32 to index
    %c0_105 = arith.constant 0 : index
    %364 = vector.load %arg1[%363, %c0_105] : memref<12x128xf32, #tpu.memory_space<vmem>>, vector<1x128xf32>
    %365 = vector.shape_cast %364 : vector<1x128xf32> to vector<128xf32>
    %366 = vector.shape_cast %365 : vector<128xf32> to vector<1x128xf32>
    %367 = arith.index_cast %c8_i32 : i32 to index
    %c0_106 = arith.constant 0 : index
    %368 = vector.load %arg2[%367, %c0_106] : memref<12x128xi32, #tpu.memory_space<vmem>>, vector<1x128xi32>
    %369 = vector.shape_cast %368 : vector<1x128xi32> to vector<128xi32>
    %370 = vector.shape_cast %369 : vector<128xi32> to vector<1x128xi32>
    %c0_i32_107 = arith.constant 0 : i32
    %371 = vector.broadcast %c0_i32_107 : i32 to vector<1x128xi32>
    %372 = arith.cmpi sgt, %370, %371 : vector<1x128xi32>
    %373 = arith.index_cast %c8_i32 : i32 to index
    %c0_108 = arith.constant 0 : index
    %374 = vector.load %arg3[%373, %c0_108] : memref<12x128xi32, #tpu.memory_space<vmem>>, vector<1x128xi32>
    %375 = vector.shape_cast %374 : vector<1x128xi32> to vector<128xi32>
    %376 = vector.shape_cast %375 : vector<128xi32> to vector<1x128xi32>
    %377 = arith.index_cast %c8_i32 : i32 to index
    %c0_109 = arith.constant 0 : index
    %378 = vector.load %arg4[%377, %c0_109] : memref<12x128xi32, #tpu.memory_space<vmem>>, vector<1x128xi32>
    %379 = vector.shape_cast %378 : vector<1x128xi32> to vector<128xi32>
    %380 = vector.shape_cast %379 : vector<128xi32> to vector<1x128xi32>
    %381 = arith.index_cast %c8_i32 : i32 to index
    %c0_110 = arith.constant 0 : index
    %382 = vector.load %arg5[%381, %c0_110] : memref<12x128xi32, #tpu.memory_space<vmem>>, vector<1x128xi32>
    %383 = vector.shape_cast %382 : vector<1x128xi32> to vector<128xi32>
    %384 = vector.shape_cast %383 : vector<128xi32> to vector<1x128xi32>
    %385 = vector.broadcast %380 : vector<1x128xi32> to vector<13x128xi32>
    %386 = arith.cmpi eq, %0, %385 : vector<13x128xi32>
    %cst_111 = arith.constant 0.000000e+00 : f32
    %387 = vector.broadcast %cst_111 : f32 to vector<13x128xf32>
    %388 = arith.select %386, %362, %387 : vector<13x128xi1>, vector<13x128xf32>
    %cst_112 = arith.constant dense<0.000000e+00> : vector<128xf32>
    %389 = vector.multi_reduction <add>, %388, %cst_112 [0] : vector<13x128xf32> to vector<128xf32>
    %390 = vector.shape_cast %389 : vector<128xf32> to vector<1x128xf32>
    %391 = vector.broadcast %384 : vector<1x128xi32> to vector<13x128xi32>
    %392 = arith.cmpi eq, %0, %391 : vector<13x128xi32>
    %cst_113 = arith.constant 0.000000e+00 : f32
    %393 = vector.broadcast %cst_113 : f32 to vector<13x128xf32>
    %394 = arith.select %392, %362, %393 : vector<13x128xi1>, vector<13x128xf32>
    %cst_114 = arith.constant dense<0.000000e+00> : vector<128xf32>
    %395 = vector.multi_reduction <add>, %394, %cst_114 [0] : vector<13x128xf32> to vector<128xf32>
    %396 = vector.shape_cast %395 : vector<128xf32> to vector<1x128xf32>
    %397 = tpu.concatenate %390, %396 in 1 : vector<1x128xf32>, vector<1x128xf32> -> vector<1x256xf32>
    %c0_115 = arith.constant 0 : index
    %c0_116 = arith.constant 0 : index
    %398 = vector.load %arg6[%c0_115, %c0_116] : memref<256x128xf32, #tpu.memory_space<vmem>>, vector<256x128xf32>
    %cst_117 = arith.constant dense<0.000000e+00> : vector<1x128xf32>
    %399 = tpu.matmul %397, %398, %cst_117 {dimension_numbers = #tpu.dot_dimension_numbers<[1], [0], [0], [1], [0, 0, 1, 1], [], []>} : vector<1x256xf32>, vector<256x128xf32>, vector<1x128xf32> -> vector<1x128xf32>
    %400 = arith.addf %399, %1 : vector<1x128xf32>
    %401 = math.tanh %400 : vector<1x128xf32>
    %402 = arith.select %372, %366, %401 : vector<1x128xi1>, vector<1x128xf32>
    %403 = vector.broadcast %376 : vector<1x128xi32> to vector<13x128xi32>
    %404 = arith.cmpi eq, %0, %403 : vector<13x128xi32>
    %405 = vector.shape_cast %402 : vector<1x128xf32> to vector<1x128xf32>
    %406 = vector.broadcast %405 : vector<1x128xf32> to vector<13x128xf32>
    %407 = arith.select %404, %406, %362 : vector<13x128xi1>, vector<13x128xf32>
    %c9_i32 = arith.constant 9 : i32
    %408 = arith.index_cast %c9_i32 : i32 to index
    %c0_118 = arith.constant 0 : index
    %409 = vector.load %arg1[%408, %c0_118] : memref<12x128xf32, #tpu.memory_space<vmem>>, vector<1x128xf32>
    %410 = vector.shape_cast %409 : vector<1x128xf32> to vector<128xf32>
    %411 = vector.shape_cast %410 : vector<128xf32> to vector<1x128xf32>
    %412 = arith.index_cast %c9_i32 : i32 to index
    %c0_119 = arith.constant 0 : index
    %413 = vector.load %arg2[%412, %c0_119] : memref<12x128xi32, #tpu.memory_space<vmem>>, vector<1x128xi32>
    %414 = vector.shape_cast %413 : vector<1x128xi32> to vector<128xi32>
    %415 = vector.shape_cast %414 : vector<128xi32> to vector<1x128xi32>
    %c0_i32_120 = arith.constant 0 : i32
    %416 = vector.broadcast %c0_i32_120 : i32 to vector<1x128xi32>
    %417 = arith.cmpi sgt, %415, %416 : vector<1x128xi32>
    %418 = arith.index_cast %c9_i32 : i32 to index
    %c0_121 = arith.constant 0 : index
    %419 = vector.load %arg3[%418, %c0_121] : memref<12x128xi32, #tpu.memory_space<vmem>>, vector<1x128xi32>
    %420 = vector.shape_cast %419 : vector<1x128xi32> to vector<128xi32>
    %421 = vector.shape_cast %420 : vector<128xi32> to vector<1x128xi32>
    %422 = arith.index_cast %c9_i32 : i32 to index
    %c0_122 = arith.constant 0 : index
    %423 = vector.load %arg4[%422, %c0_122] : memref<12x128xi32, #tpu.memory_space<vmem>>, vector<1x128xi32>
    %424 = vector.shape_cast %423 : vector<1x128xi32> to vector<128xi32>
    %425 = vector.shape_cast %424 : vector<128xi32> to vector<1x128xi32>
    %426 = arith.index_cast %c9_i32 : i32 to index
    %c0_123 = arith.constant 0 : index
    %427 = vector.load %arg5[%426, %c0_123] : memref<12x128xi32, #tpu.memory_space<vmem>>, vector<1x128xi32>
    %428 = vector.shape_cast %427 : vector<1x128xi32> to vector<128xi32>
    %429 = vector.shape_cast %428 : vector<128xi32> to vector<1x128xi32>
    %430 = vector.broadcast %425 : vector<1x128xi32> to vector<13x128xi32>
    %431 = arith.cmpi eq, %0, %430 : vector<13x128xi32>
    %cst_124 = arith.constant 0.000000e+00 : f32
    %432 = vector.broadcast %cst_124 : f32 to vector<13x128xf32>
    %433 = arith.select %431, %407, %432 : vector<13x128xi1>, vector<13x128xf32>
    %cst_125 = arith.constant dense<0.000000e+00> : vector<128xf32>
    %434 = vector.multi_reduction <add>, %433, %cst_125 [0] : vector<13x128xf32> to vector<128xf32>
    %435 = vector.shape_cast %434 : vector<128xf32> to vector<1x128xf32>
    %436 = vector.broadcast %429 : vector<1x128xi32> to vector<13x128xi32>
    %437 = arith.cmpi eq, %0, %436 : vector<13x128xi32>
    %cst_126 = arith.constant 0.000000e+00 : f32
    %438 = vector.broadcast %cst_126 : f32 to vector<13x128xf32>
    %439 = arith.select %437, %407, %438 : vector<13x128xi1>, vector<13x128xf32>
    %cst_127 = arith.constant dense<0.000000e+00> : vector<128xf32>
    %440 = vector.multi_reduction <add>, %439, %cst_127 [0] : vector<13x128xf32> to vector<128xf32>
    %441 = vector.shape_cast %440 : vector<128xf32> to vector<1x128xf32>
    %442 = tpu.concatenate %435, %441 in 1 : vector<1x128xf32>, vector<1x128xf32> -> vector<1x256xf32>
    %c0_128 = arith.constant 0 : index
    %c0_129 = arith.constant 0 : index
    %443 = vector.load %arg6[%c0_128, %c0_129] : memref<256x128xf32, #tpu.memory_space<vmem>>, vector<256x128xf32>
    %cst_130 = arith.constant dense<0.000000e+00> : vector<1x128xf32>
    %444 = tpu.matmul %442, %443, %cst_130 {dimension_numbers = #tpu.dot_dimension_numbers<[1], [0], [0], [1], [0, 0, 1, 1], [], []>} : vector<1x256xf32>, vector<256x128xf32>, vector<1x128xf32> -> vector<1x128xf32>
    %445 = arith.addf %444, %1 : vector<1x128xf32>
    %446 = math.tanh %445 : vector<1x128xf32>
    %447 = arith.select %417, %411, %446 : vector<1x128xi1>, vector<1x128xf32>
    %448 = vector.broadcast %421 : vector<1x128xi32> to vector<13x128xi32>
    %449 = arith.cmpi eq, %0, %448 : vector<13x128xi32>
    %450 = vector.shape_cast %447 : vector<1x128xf32> to vector<1x128xf32>
    %451 = vector.broadcast %450 : vector<1x128xf32> to vector<13x128xf32>
    %452 = arith.select %449, %451, %407 : vector<13x128xi1>, vector<13x128xf32>
    %c10_i32 = arith.constant 10 : i32
    %453 = arith.index_cast %c10_i32 : i32 to index
    %c0_131 = arith.constant 0 : index
    %454 = vector.load %arg1[%453, %c0_131] : memref<12x128xf32, #tpu.memory_space<vmem>>, vector<1x128xf32>
    %455 = vector.shape_cast %454 : vector<1x128xf32> to vector<128xf32>
    %456 = vector.shape_cast %455 : vector<128xf32> to vector<1x128xf32>
    %457 = arith.index_cast %c10_i32 : i32 to index
    %c0_132 = arith.constant 0 : index
    %458 = vector.load %arg2[%457, %c0_132] : memref<12x128xi32, #tpu.memory_space<vmem>>, vector<1x128xi32>
    %459 = vector.shape_cast %458 : vector<1x128xi32> to vector<128xi32>
    %460 = vector.shape_cast %459 : vector<128xi32> to vector<1x128xi32>
    %c0_i32_133 = arith.constant 0 : i32
    %461 = vector.broadcast %c0_i32_133 : i32 to vector<1x128xi32>
    %462 = arith.cmpi sgt, %460, %461 : vector<1x128xi32>
    %463 = arith.index_cast %c10_i32 : i32 to index
    %c0_134 = arith.constant 0 : index
    %464 = vector.load %arg3[%463, %c0_134] : memref<12x128xi32, #tpu.memory_space<vmem>>, vector<1x128xi32>
    %465 = vector.shape_cast %464 : vector<1x128xi32> to vector<128xi32>
    %466 = vector.shape_cast %465 : vector<128xi32> to vector<1x128xi32>
    %467 = arith.index_cast %c10_i32 : i32 to index
    %c0_135 = arith.constant 0 : index
    %468 = vector.load %arg4[%467, %c0_135] : memref<12x128xi32, #tpu.memory_space<vmem>>, vector<1x128xi32>
    %469 = vector.shape_cast %468 : vector<1x128xi32> to vector<128xi32>
    %470 = vector.shape_cast %469 : vector<128xi32> to vector<1x128xi32>
    %471 = arith.index_cast %c10_i32 : i32 to index
    %c0_136 = arith.constant 0 : index
    %472 = vector.load %arg5[%471, %c0_136] : memref<12x128xi32, #tpu.memory_space<vmem>>, vector<1x128xi32>
    %473 = vector.shape_cast %472 : vector<1x128xi32> to vector<128xi32>
    %474 = vector.shape_cast %473 : vector<128xi32> to vector<1x128xi32>
    %475 = vector.broadcast %470 : vector<1x128xi32> to vector<13x128xi32>
    %476 = arith.cmpi eq, %0, %475 : vector<13x128xi32>
    %cst_137 = arith.constant 0.000000e+00 : f32
    %477 = vector.broadcast %cst_137 : f32 to vector<13x128xf32>
    %478 = arith.select %476, %452, %477 : vector<13x128xi1>, vector<13x128xf32>
    %cst_138 = arith.constant dense<0.000000e+00> : vector<128xf32>
    %479 = vector.multi_reduction <add>, %478, %cst_138 [0] : vector<13x128xf32> to vector<128xf32>
    %480 = vector.shape_cast %479 : vector<128xf32> to vector<1x128xf32>
    %481 = vector.broadcast %474 : vector<1x128xi32> to vector<13x128xi32>
    %482 = arith.cmpi eq, %0, %481 : vector<13x128xi32>
    %cst_139 = arith.constant 0.000000e+00 : f32
    %483 = vector.broadcast %cst_139 : f32 to vector<13x128xf32>
    %484 = arith.select %482, %452, %483 : vector<13x128xi1>, vector<13x128xf32>
    %cst_140 = arith.constant dense<0.000000e+00> : vector<128xf32>
    %485 = vector.multi_reduction <add>, %484, %cst_140 [0] : vector<13x128xf32> to vector<128xf32>
    %486 = vector.shape_cast %485 : vector<128xf32> to vector<1x128xf32>
    %487 = tpu.concatenate %480, %486 in 1 : vector<1x128xf32>, vector<1x128xf32> -> vector<1x256xf32>
    %c0_141 = arith.constant 0 : index
    %c0_142 = arith.constant 0 : index
    %488 = vector.load %arg6[%c0_141, %c0_142] : memref<256x128xf32, #tpu.memory_space<vmem>>, vector<256x128xf32>
    %cst_143 = arith.constant dense<0.000000e+00> : vector<1x128xf32>
    %489 = tpu.matmul %487, %488, %cst_143 {dimension_numbers = #tpu.dot_dimension_numbers<[1], [0], [0], [1], [0, 0, 1, 1], [], []>} : vector<1x256xf32>, vector<256x128xf32>, vector<1x128xf32> -> vector<1x128xf32>
    %490 = arith.addf %489, %1 : vector<1x128xf32>
    %491 = math.tanh %490 : vector<1x128xf32>
    %492 = arith.select %462, %456, %491 : vector<1x128xi1>, vector<1x128xf32>
    %493 = vector.broadcast %466 : vector<1x128xi32> to vector<13x128xi32>
    %494 = arith.cmpi eq, %0, %493 : vector<13x128xi32>
    %495 = vector.shape_cast %492 : vector<1x128xf32> to vector<1x128xf32>
    %496 = vector.broadcast %495 : vector<1x128xf32> to vector<13x128xf32>
    %497 = arith.select %494, %496, %452 : vector<13x128xi1>, vector<13x128xf32>
    %c11_i32 = arith.constant 11 : i32
    %498 = arith.index_cast %c11_i32 : i32 to index
    %c0_144 = arith.constant 0 : index
    %499 = vector.load %arg1[%498, %c0_144] : memref<12x128xf32, #tpu.memory_space<vmem>>, vector<1x128xf32>
    %500 = vector.shape_cast %499 : vector<1x128xf32> to vector<128xf32>
    %501 = vector.shape_cast %500 : vector<128xf32> to vector<1x128xf32>
    %502 = arith.index_cast %c11_i32 : i32 to index
    %c0_145 = arith.constant 0 : index
    %503 = vector.load %arg2[%502, %c0_145] : memref<12x128xi32, #tpu.memory_space<vmem>>, vector<1x128xi32>
    %504 = vector.shape_cast %503 : vector<1x128xi32> to vector<128xi32>
    %505 = vector.shape_cast %504 : vector<128xi32> to vector<1x128xi32>
    %c0_i32_146 = arith.constant 0 : i32
    %506 = vector.broadcast %c0_i32_146 : i32 to vector<1x128xi32>
    %507 = arith.cmpi sgt, %505, %506 : vector<1x128xi32>
    %508 = arith.index_cast %c11_i32 : i32 to index
    %c0_147 = arith.constant 0 : index
    %509 = vector.load %arg3[%508, %c0_147] : memref<12x128xi32, #tpu.memory_space<vmem>>, vector<1x128xi32>
    %510 = vector.shape_cast %509 : vector<1x128xi32> to vector<128xi32>
    %511 = vector.shape_cast %510 : vector<128xi32> to vector<1x128xi32>
    %512 = arith.index_cast %c11_i32 : i32 to index
    %c0_148 = arith.constant 0 : index
    %513 = vector.load %arg4[%512, %c0_148] : memref<12x128xi32, #tpu.memory_space<vmem>>, vector<1x128xi32>
    %514 = vector.shape_cast %513 : vector<1x128xi32> to vector<128xi32>
    %515 = vector.shape_cast %514 : vector<128xi32> to vector<1x128xi32>
    %516 = arith.index_cast %c11_i32 : i32 to index
    %c0_149 = arith.constant 0 : index
    %517 = vector.load %arg5[%516, %c0_149] : memref<12x128xi32, #tpu.memory_space<vmem>>, vector<1x128xi32>
    %518 = vector.shape_cast %517 : vector<1x128xi32> to vector<128xi32>
    %519 = vector.shape_cast %518 : vector<128xi32> to vector<1x128xi32>
    %520 = vector.broadcast %515 : vector<1x128xi32> to vector<13x128xi32>
    %521 = arith.cmpi eq, %0, %520 : vector<13x128xi32>
    %cst_150 = arith.constant 0.000000e+00 : f32
    %522 = vector.broadcast %cst_150 : f32 to vector<13x128xf32>
    %523 = arith.select %521, %497, %522 : vector<13x128xi1>, vector<13x128xf32>
    %cst_151 = arith.constant dense<0.000000e+00> : vector<128xf32>
    %524 = vector.multi_reduction <add>, %523, %cst_151 [0] : vector<13x128xf32> to vector<128xf32>
    %525 = vector.shape_cast %524 : vector<128xf32> to vector<1x128xf32>
    %526 = vector.broadcast %519 : vector<1x128xi32> to vector<13x128xi32>
    %527 = arith.cmpi eq, %0, %526 : vector<13x128xi32>
    %cst_152 = arith.constant 0.000000e+00 : f32
    %528 = vector.broadcast %cst_152 : f32 to vector<13x128xf32>
    %529 = arith.select %527, %497, %528 : vector<13x128xi1>, vector<13x128xf32>
    %cst_153 = arith.constant dense<0.000000e+00> : vector<128xf32>
    %530 = vector.multi_reduction <add>, %529, %cst_153 [0] : vector<13x128xf32> to vector<128xf32>
    %531 = vector.shape_cast %530 : vector<128xf32> to vector<1x128xf32>
    %532 = tpu.concatenate %525, %531 in 1 : vector<1x128xf32>, vector<1x128xf32> -> vector<1x256xf32>
    %c0_154 = arith.constant 0 : index
    %c0_155 = arith.constant 0 : index
    %533 = vector.load %arg6[%c0_154, %c0_155] : memref<256x128xf32, #tpu.memory_space<vmem>>, vector<256x128xf32>
    %cst_156 = arith.constant dense<0.000000e+00> : vector<1x128xf32>
    %534 = tpu.matmul %532, %533, %cst_156 {dimension_numbers = #tpu.dot_dimension_numbers<[1], [0], [0], [1], [0, 0, 1, 1], [], []>} : vector<1x256xf32>, vector<256x128xf32>, vector<1x128xf32> -> vector<1x128xf32>
    %535 = arith.addf %534, %1 : vector<1x128xf32>
    %536 = math.tanh %535 : vector<1x128xf32>
    %537 = arith.select %507, %501, %536 : vector<1x128xi1>, vector<1x128xf32>
    %538 = vector.broadcast %511 : vector<1x128xi32> to vector<13x128xi32>
    %539 = arith.cmpi eq, %0, %538 : vector<13x128xi32>
    %540 = vector.shape_cast %537 : vector<1x128xf32> to vector<1x128xf32>
    %541 = vector.broadcast %540 : vector<1x128xf32> to vector<13x128xf32>
    %542 = arith.select %539, %541, %497 : vector<13x128xi1>, vector<13x128xf32>
    %c12_i32 = arith.constant 12 : i32
    %543 = vector.extract_strided_slice %542 {offsets = [0, 0], sizes = [1, 128], strides = [1, 1]} : vector<13x128xf32> to vector<1x128xf32>
    %c0_157 = arith.constant 0 : index
    %c0_158 = arith.constant 0 : index
    %544 = vector.load %arg8[%c0_157, %c0_158] : memref<1x128xf32, #tpu.memory_space<vmem>>, vector<1x128xf32>
    tpu.vector_store %arg8[%c0_157, %c0_158], %543 {strides = array<i32>} : memref<1x128xf32, #tpu.memory_space<vmem>>, vector<1x128xf32>,
    return
  }
  func.func @transform_0(%arg0: i32) -> (i32, i32) {
    %c0_i32 = arith.constant 0 : i32
    %c0_i32_0 = arith.constant 0 : i32
    %c0_i32_1 = arith.constant 0 : i32
    return %c0_i32, %c0_i32_0 : i32, i32
  }
  func.func @transform_1(%arg0: i32) -> (i32, i32) {
    %c0_i32 = arith.constant 0 : i32
    %c0_i32_0 = arith.constant 0 : i32
    %c0_i32_1 = arith.constant 0 : i32
    return %c0_i32, %c0_i32_0 : i32, i32
  }
  func.func @transform_2(%arg0: i32) -> (i32, i32) {
    %c0_i32 = arith.constant 0 : i32
    %c0_i32_0 = arith.constant 0 : i32
    %c0_i32_1 = arith.constant 0 : i32
    return %c0_i32, %c0_i32_0 : i32, i32
  }
  func.func @transform_3(%arg0: i32) -> (i32, i32) {
    %c0_i32 = arith.constant 0 : i32
    %c0_i32_0 = arith.constant 0 : i32
    %c0_i32_1 = arith.constant 0 : i32
    return %c0_i32, %c0_i32_0 : i32, i32
  }
  func.func @transform_4(%arg0: i32) -> (i32, i32) {
    %c0_i32 = arith.constant 0 : i32
    %c0_i32_0 = arith.constant 0 : i32
    %c0_i32_1 = arith.constant 0 : i32
    return %c0_i32, %c0_i32_0 : i32, i32
  }
  func.func @transform_5(%arg0: i32) -> (i32, i32) {
    %c0_i32 = arith.constant 0 : i32
    %c0_i32_0 = arith.constant 0 : i32
    %c0_i32_1 = arith.constant 0 : i32
    return %c0_i32, %c0_i32_0 : i32, i32
  }
  func.func @transform_6(%arg0: i32) -> (i32, i32) {
    %c0_i32 = arith.constant 0 : i32
    %c0_i32_0 = arith.constant 0 : i32
    %c0_i32_1 = arith.constant 0 : i32
    return %c0_i32, %c0_i32_0 : i32, i32
  }
  func.func @transform_7(%arg0: i32) -> (i32, i32) {
    %c0_i32 = arith.constant 0 : i32
    %c0_i32_0 = arith.constant 0 : i32
    %c0_i32_1 = arith.constant 0 : i32
    return %c0_i32, %c0_i32_0 : i32, i32
  }
}

</mosaic_0001>

<bundles_post_ra>
// kernel: tpu_custom_call.1
= control target key start
LH: loop header
LB: loop body
LE: loop exit
PB: predicated region body
PF: predicated region fallthrough
CT: control target
= control target key end

     0   :  { %12 = vsyncpa [#allocation3], 0  ;;  %s3088_s0 = inlined_call_operand.hbm [shape: f32[12,128], index: 0, kind: input, shape index: {}]   ;;  %s3089_s1 = inlined_call_operand.hbm [shape: s32[12,128], index: 1, kind: input, shape index: {}]   ;;  %s3090_s2 = inlined_call_operand.hbm [shape: s32[12,128], index: 2, kind: input, shape index: {}]   ;;  %s3091_s3 = inlined_call_operand.hbm [shape: s32[12,128], index: 3, kind: input, shape index: {}]   ;;  %s3092_s4 = inlined_call_operand.hbm [shape: s32[12,128], index: 4, kind: input, shape index: {}]   ;;  %s3093_s5 = inlined_call_operand.hbm [shape: f32[256,128], index: 5, kind: input, shape index: {}]   ;;  %s3094_s6 = inlined_call_operand.vmem [shape: f32[1,128], index: 6, kind: input, shape index: {}]   ;;  %s3095_s7 = inlined_call_operand.hbm [shape: f32[1,128], index: 7, kind: output, shape index: {}]  }
   0x1   :  { %13 = vsyncpa [#allocation6], 0 }
   0x2   :  { %14 = vsyncpa [#allocation9], 0 }
   0x3   :  { %15 = vsyncpa [#allocation12], 0 }
   0x4   :  { %16 = vsyncpa [#allocation4], 0  ;;  %s2264_s24 = smov [#allocation5]   ;;  %s2265_s26 = smov [#allocation8]  }
   0x5   :  { %s34_s25 = sshll.u32 %s2264_s24, 4  ;;  %s58_s27 = sshll.u32 %s2265_s26, 4  ;;  %s35_s25 = int_to_ptr.vmem [resolvable:$true] %s34_s25  ;;  %s59_s27 = int_to_ptr.vmem [resolvable:$true] %s58_s27 }
   0x6   :  { %s2122_s28 = scalar_lea.vmem %s35_s25, 256  ;;  %p2127_p1 = scmp.lt.s32.totalorder %s35_s25, %s35_s25 }
   0x7   :  { %p2123_p0 = scmp.ne.s32.totalorder %s35_s25, %s2122_s28  ;;  %p2128_p2 = scmp.lt.s32.totalorder %s2122_s28, %s2122_s28 }
   0x9   :  { %p2129_p3 = por %p2128_p2, %p2127_p1 }
   0xb   :  { %p2130_p4 = pnand %p2129_p3, %p2123_p0 }
   0xd   :  { %2133 = shalt.err (!%p2130_p4)
}
   0xe   :  { %s2266_s29 = smov 128   ;;  %s2267_s30 = smov 8  }
   0xf   :  { %40 = dma.hbm_to_vmem [thread:$0]  %s3089_s1, 256, %s35_s25, [#allocation6], %s2266_s29, %s2266_s29, %s2267_s30  }
  0x10   :  { %s2142_s10 = scalar_lea.vmem %s59_s27, 256  ;;  %p2147_p6 = scmp.lt.s32.totalorder %s59_s27, %s59_s27 }
  0x11   :  { %p2143_p5 = scmp.ne.s32.totalorder %s59_s27, %s2142_s10  ;;  %p2148_p7 = scmp.lt.s32.totalorder %s2142_s10, %s2142_s10 }
  0x13   :  { %p2149_p8 = por %p2148_p7, %p2147_p6 }
  0x15   :  { %p2150_p9 = pnand %p2149_p8, %p2143_p5 }
  0x17   :  { %2153 = shalt.err (!%p2150_p9)
}
  0x18   :  { %64 = dma.hbm_to_vmem [thread:$0]  %s3091_s3, 256, %s59_s27, [#allocation9], %s2266_s29, %s2266_s29, %s2267_s30  }
  0x19   :  { %s2268_s13 = smov [#allocation2]   ;;  %s2269_s15 = smov [#allocation7]  }
  0x1a   :  { %s22_s14 = sshll.u32 %s2268_s13, 4  ;;  %s46_s16 = sshll.u32 %s2269_s15, 4  ;;  %s23_s14 = int_to_ptr.vmem [resolvable:$true] %s22_s14  ;;  %s47_s16 = int_to_ptr.vmem [resolvable:$true] %s46_s16 }
  0x1b   :  { %s2162_s1 = scalar_lea.vmem %s23_s14, 256  ;;  %p2167_p11 = scmp.lt.s32.totalorder %s23_s14, %s23_s14 }
  0x1c   :  { %p2163_p10 = scmp.ne.s32.totalorder %s23_s14, %s2162_s1  ;;  %p2168_p12 = scmp.lt.s32.totalorder %s2162_s1, %s2162_s1 }
  0x1e   :  { %p2169_p13 = por %p2168_p12, %p2167_p11 }
  0x20   :  { %p2170_p0 = pnand %p2169_p13, %p2163_p10 }
  0x22   :  { %2173 = shalt.err (!%p2170_p0)
}
  0x23   :  { %28 = dma.hbm_to_vmem [thread:$0]  %s3088_s0, 256, %s23_s14, [#allocation3], %s2266_s29, %s2266_s29, %s2267_s30  }
  0x24   :  { %s2182_s3 = scalar_lea.vmem %s47_s16, 256  ;;  %p2187_p2 = scmp.lt.s32.totalorder %s47_s16, %s47_s16 }
  0x25   :  { %p2183_p1 = scmp.ne.s32.totalorder %s47_s16, %s2182_s3  ;;  %p2188_p3 = scmp.lt.s32.totalorder %s2182_s3, %s2182_s3 }
  0x27   :  { %p2189_p4 = por %p2188_p3, %p2187_p2 }
  0x29   :  { %p2190_p5 = pnand %p2189_p4, %p2183_p1 }
  0x2b   :  { %2193 = shalt.err (!%p2190_p5)
}
  0x2c   :  { %52 = dma.hbm_to_vmem [thread:$0]  %s3090_s2, 256, %s47_s16, [#allocation6], %s2266_s29, %s2266_s29, %s2267_s30  }
  0x2d   :  { %s2270_s21 = smov [#allocation10]   ;;  %s2271_s23 = smov [#allocation11]  }
  0x2e   :  { %s70_s22 = sshll.u32 %s2270_s21, 4  ;;  %s82_s24 = sshll.u32 %s2271_s23, 4  ;;  %s71_s22 = int_to_ptr.vmem [resolvable:$true] %s70_s22  ;;  %s83_s24 = int_to_ptr.vmem [resolvable:$true] %s82_s24 }
  0x2f   :  { %s2202_s0 = scalar_lea.vmem %s71_s22, 256  ;;  %p2207_p7 = scmp.lt.s32.totalorder %s71_s22, %s71_s22 }
  0x30   :  { %p2203_p6 = scmp.ne.s32.totalorder %s71_s22, %s2202_s0  ;;  %p2208_p8 = scmp.lt.s32.totalorder %s2202_s0, %s2202_s0 }
  0x32   :  { %p2209_p9 = por %p2208_p8, %p2207_p7 }
  0x34   :  { %p2210_p10 = pnand %p2209_p9, %p2203_p6 }
  0x36   :  { %2213 = shalt.err (!%p2210_p10)
}
  0x37   :  { %76 = dma.hbm_to_vmem [thread:$0]  %s3092_s4, 256, %s71_s22, [#allocation9], %s2266_s29, %s2266_s29, %s2267_s30  }
  0x38   :  { %s2222_s2 = scalar_lea.vmem %s83_s24, 4096  ;;  %p2227_p12 = scmp.lt.s32.totalorder %s83_s24, %s83_s24 }
  0x39   :  { %p2223_p11 = scmp.ne.s32.totalorder %s83_s24, %s2222_s2  ;;  %p2228_p13 = scmp.lt.s32.totalorder %s2222_s2, %s2222_s2 }
  0x3b   :  { %p2229_p0 = por %p2228_p13, %p2227_p12 }
  0x3d   :  { %p2230_p1 = pnand %p2229_p0, %p2223_p11 }
  0x3f   :  { %2233 = shalt.err (!%p2230_p1)
}
  0x40   :  { %88 = dma.hbm_to_vmem [thread:$0]  %s3093_s5, 4096, %s83_s24, [#allocation12], %s2266_s29, %s2266_s29, %s2267_s30  }
  0x41   :  { %2254 = dma.done.wait [#allocation3], 256  }
  0x42   :  { %2255 = vsyncadd [#allocation3], 4294967040 }
  0x43   :  { %2256 = dma.done.wait [#allocation6], 512  }
  0x44   :  { %2257 = vsyncadd [#allocation6], 4294966784 }
  0x45   :  { %2258 = dma.done.wait [#allocation9], 512  }
  0x46   :  { %2259 = vsyncadd [#allocation9], 4294966784 }
  0x47   :  { %2260 = dma.done.wait [#allocation12], 4096  }
  0x48   :  { %2261 = vsyncadd [#allocation12], 4294963200  ;;  %v2272_v0 = vmov 0.0   ;;  %v2351_v1 = vld [vmem:[#allocation11 + $0xf8] sm:$0xff]  ;;  %v2355_v3 = vld [vmem:[#allocation11 + $0xf0] sm:$0xff]  ;;  %v109_v38 = vlaneseq  ;;  %vm247_vm7 = vcmask 1044480  }
  0x49   :  { %213 = vmatprep.mubr.f32.mxu0 %v2272_v0  ;;  %v2353_v2 = vld [vmem:[#allocation11 + $0x78] sm:$0xff]  ;;  %1627 = vmatprep.subr.mxu0 %v2351_v1  ;;  %v2358_v4 = vld [vmem:[#allocation11 + $0x70] sm:$0xff]  ;;  %v2362_v5 = vld [vmem:[#allocation11 + $0xe8] sm:$0xff] }
  0x4a   :  { %1662 = vmatprep.subr.mxu1 %v2351_v1  ;;  %1628 = vmatpush3.msra.mxu0 %v2353_v2  ;;  %v2366_v6 = vld [vmem:[#allocation11 + $0x68] sm:$0xff]  ;;  %v2370_v7 = vld [vmem:[#allocation11 + $0xe0] sm:$0xff]  ;;  %v2378_v9 = vld [vmem:[#allocation11 + $0xd8] sm:$0xff]  ;;  %v2520_v39 = vshrl.u32 %v109_v38, 7 }
  0x4b   :  { %1663 = vmatpush3.msra.mxu1 %v2353_v2  ;;  %1629 = vmatprep.subr.mxu0 %v2355_v3  ;;  %v2374_v8 = vld [vmem:[#allocation11 + $0x60] sm:$0xff]  ;;  %v2382_v10 = vld [vmem:[#allocation11 + $0x58] sm:$0xff]  ;;  %v2386_v11 = vld [vmem:[#allocation11 + $0xd0] sm:$0xff] }
  0x4c   :  { %1664 = vmatprep.subr.mxu1 %v2355_v3  ;;  %1630 = vmatpush3.msra.mxu0 %v2358_v4  ;;  %v2390_v12 = vld [vmem:[#allocation11 + $0x50] sm:$0xff]  ;;  %v2394_v13 = vld [vmem:[#allocation11 + $0xc8] sm:$0xff]  ;;  %v2402_v15 = vld [vmem:[#allocation11 + $0xc0] sm:$0xff]  ;;  %v2523_v41 = vadd.s32 8, %v2520_v39  ;;  %v2526_v44 = vsub.s32 0, %v2520_v39 }
  0x4d   :  { %1665 = vmatpush3.msra.mxu1 %v2358_v4  ;;  %1631 = vmatprep.subr.mxu0 %v2362_v5  ;;  %v2398_v14 = vld [vmem:[#allocation11 + $0x48] sm:$0xff]  ;;  %v2406_v16 = vld [vmem:[#allocation11 + $0x40] sm:$0xff]  ;;  %v2410_v17 = vld [vmem:[#allocation11 + $0xb8] sm:$0xff] }
  0x4e   :  { %1666 = vmatprep.subr.mxu1 %v2362_v5  ;;  %1632 = vmatpush3.msra.mxu0 %v2366_v6  ;;  %v2414_v18 = vld [vmem:[#allocation11 + $0x38] sm:$0xff]  ;;  %v2418_v19 = vld [vmem:[#allocation11 + $0xb0] sm:$0xff]  ;;  %v2426_v21 = vld [vmem:[#allocation11 + $0xa8] sm:$0xff] }
  0x4f   :  { %1667 = vmatpush3.msra.mxu1 %v2366_v6  ;;  %1633 = vmatprep.subr.mxu0 %v2370_v7  ;;  %v2422_v20 = vld [vmem:[#allocation11 + $0x30] sm:$0xff]  ;;  %v2430_v22 = vld [vmem:[#allocation11 + $0x28] sm:$0xff]  ;;  %v2434_v23 = vld [vmem:[#allocation11 + $0xa0] sm:$0xff] }
  0x50   :  { %1668 = vmatprep.subr.mxu1 %v2370_v7  ;;  %1634 = vmatpush3.msra.mxu0 %v2374_v8  ;;  %v2438_v24 = vld [vmem:[#allocation11 + $0x20] sm:$0xff]  ;;  %v2442_v25 = vld [vmem:[#allocation11 + $0x98] sm:$0xff]  ;;  %v2450_v27 = vld [vmem:[#allocation11 + $0x90] sm:$0xff] }
  0x51   :  { %1669 = vmatpush3.msra.mxu1 %v2374_v8  ;;  %1635 = vmatprep.subr.mxu0 %v2378_v9  ;;  %v2446_v26 = vld [vmem:[#allocation11 + $0x18] sm:$0xff]  ;;  %v2454_v28 = vld [vmem:[#allocation11 + $0x10] sm:$0xff]  ;;  %v2458_v29 = vld [vmem:[#allocation11 + $0x88] sm:$0xff] }
  0x52   :  { %1670 = vmatprep.subr.mxu1 %v2378_v9  ;;  %1636 = vmatpush3.msra.mxu0 %v2382_v10  ;;  %v2462_v30 = vld [vmem:[#allocation11 + $0x8] sm:$0xff]  ;;  %v2466_v31 = vld [vmem:[#allocation11 + $0x80] sm:$0xff]  ;;  %v2517_v34 = vld [vmem:[%s3094_s6] sm:$0x1] }
  0x53   :  { %1671 = vmatpush3.msra.mxu1 %v2382_v10  ;;  %1637 = vmatprep.subr.mxu0 %v2386_v11  ;;  %v2470_v32 = vld [vmem:[#allocation11] sm:$0xff]  ;;  %v113_v42 = vld [vmem:[#allocation2] sm:$0x1]  ;;  %v1595_v45 = vld [vmem:[#allocation10 + $0x1] ss:$0 sm:$0xff] }
  0x54   :  { %1672 = vmatprep.subr.mxu1 %v2386_v11  ;;  %1638 = vmatpush3.msra.mxu0 %v2390_v12  ;;  %v114_v40 = vld [vmem:[#allocation5] sm:$0x1]  ;;  %v1593_v43 = vld [vmem:[#allocation7] ss:$0 sm:$0xff]  ;;  %v1594_v46 = vld [vmem:[#allocation8 + $0x1] ss:$0 sm:$0xff]  ;;  %vm260_vm3 = vcmp.eq.s32.totalorder %v2520_v39, %v1595_v45  ;;  %vm261_vm4 = vcmp.eq.s32.totalorder %v2523_v41, %v1595_v45 }
  0x55   :  { %1673 = vmatpush3.msra.mxu1 %v2390_v12  ;;  %1639 = vmatprep.subr.mxu0 %v2394_v13  ;;  %vm115_vm0 = vcmp.gt.s32.totalorder %v114_v40, 0  ;;  %vm225_vm1 = vcmp.eq.s32.totalorder %v2520_v39, %v1593_v43  ;;  %vm226_vm2 = vcmp.eq.s32.totalorder %v2523_v41, %v1593_v43  ;;  %vm243_vm5 = vcmp.eq.s32.totalorder %v2520_v39, %v1594_v46 }
  0x56   :  { %1674 = vmatprep.subr.mxu1 %v2394_v13  ;;  %1640 = vmatpush3.msra.mxu0 %v2398_v14  ;;  %vm244_vm6 = vcmp.eq.s32.totalorder %v2523_v41, %v1594_v46 }
  0x57   :  { %1675 = vmatpush3.msra.mxu1 %v2398_v14  ;;  %1641 = vmatprep.subr.mxu0 %v2402_v15 }
  0x58   :  { %1676 = vmatprep.subr.mxu1 %v2402_v15  ;;  %1642 = vmatpush3.msra.mxu0 %v2406_v16 }
  0x59   :  { %1677 = vmatpush3.msra.mxu1 %v2406_v16  ;;  %1643 = vmatprep.subr.mxu0 %v2410_v17 }
  0x5a   :  { %1678 = vmatprep.subr.mxu1 %v2410_v17  ;;  %1644 = vmatpush3.msra.mxu0 %v2414_v18 }
  0x5b   :  { %1679 = vmatpush3.msra.mxu1 %v2414_v18  ;;  %1645 = vmatprep.subr.mxu0 %v2418_v19 }
  0x5c   :  { %1680 = vmatprep.subr.mxu1 %v2418_v19  ;;  %1646 = vmatpush3.msra.mxu0 %v2422_v20 }
  0x5d   :  { %1681 = vmatpush3.msra.mxu1 %v2422_v20  ;;  %1647 = vmatprep.subr.mxu0 %v2426_v21 }
  0x5e   :  { %1682 = vmatprep.subr.mxu1 %v2426_v21  ;;  %1648 = vmatpush3.msra.mxu0 %v2430_v22 }
  0x5f   :  { %1683 = vmatpush3.msra.mxu1 %v2430_v22  ;;  %1649 = vmatprep.subr.mxu0 %v2434_v23 }
  0x60   :  { %1684 = vmatprep.subr.mxu1 %v2434_v23  ;;  %1650 = vmatpush3.msra.mxu0 %v2438_v24 }
  0x61   :  { %1685 = vmatpush3.msra.mxu1 %v2438_v24  ;;  %1651 = vmatprep.subr.mxu0 %v2442_v25 }
  0x62   :  { %1686 = vmatprep.subr.mxu1 %v2442_v25  ;;  %1652 = vmatpush3.msra.mxu0 %v2446_v26 }
  0x63   :  { %1687 = vmatpush3.msra.mxu1 %v2446_v26  ;;  %1653 = vmatprep.subr.mxu0 %v2450_v27 }
  0x64   :  { %1688 = vmatprep.subr.mxu1 %v2450_v27  ;;  %1654 = vmatpush3.msra.mxu0 %v2454_v28 }
  0x65   :  { %1689 = vmatpush3.msra.mxu1 %v2454_v28  ;;  %1655 = vmatprep.subr.mxu0 %v2458_v29 }
  0x66   :  { %1690 = vmatprep.subr.mxu1 %v2458_v29  ;;  %1656 = vmatpush3.msra.mxu0 %v2462_v30 }
  0x67   :  { %1691 = vmatpush3.msra.mxu1 %v2462_v30  ;;  %1657 = vmatprep.subr.mxu0 %v2466_v31 }
  0x68   :  { %1692 = vmatprep.subr.mxu1 %v2466_v31  ;;  %1658 = vmatpush3.msra.mxu0 %v2470_v32 }
  0x69   :  { %1693 = vmatpush3.msra.mxu1 %v2470_v32  ;;  %214 = vmatmul.mubr.f32.vlgmr.msra.gmra.mxu0 %v2272_v0 }
  0x6a   :  { %1697 = vmatprep.subr.mxu0 %v2351_v1  ;;  %1732 = vmatprep.subr.mxu1 %v2351_v1 }
  0x6b   :  { %1698 = vmatpush3.msra.mxu0 %v2353_v2 }
  0x6c   :  { %1699 = vmatprep.subr.mxu0 %v2355_v3 }
  0x6d   :  { %1700 = vmatpush3.msra.mxu0 %v2358_v4 }
  0x6e   :  { %1701 = vmatprep.subr.mxu0 %v2362_v5 }
  0x6f   :  { %1702 = vmatpush3.msra.mxu0 %v2366_v6 }
  0x70   :  { %1703 = vmatprep.subr.mxu0 %v2370_v7 }
  0x71   :  { %1704 = vmatpush3.msra.mxu0 %v2374_v8 }
  0x72   :  { %1705 = vmatprep.subr.mxu0 %v2378_v9 }
  0x73   :  { %1706 = vmatpush3.msra.mxu0 %v2382_v10 }
  0x74   :  { %1707 = vmatprep.subr.mxu0 %v2386_v11 }
  0x75   :  { %1708 = vmatpush3.msra.mxu0 %v2390_v12 }
  0x76   :  { %1709 = vmatprep.subr.mxu0 %v2394_v13 }
  0x77   :  { %1710 = vmatpush3.msra.mxu0 %v2398_v14 }
  0x78   :  { %1711 = vmatprep.subr.mxu0 %v2402_v15 }
  0x79   :  { %1712 = vmatpush3.msra.mxu0 %v2406_v16 }
  0x7a   :  { %1713 = vmatprep.subr.mxu0 %v2410_v17 }
  0x7b   :  { %1714 = vmatpush3.msra.mxu0 %v2414_v18 }
  0x7c   :  { %1715 = vmatprep.subr.mxu0 %v2418_v19 }
  0x7d   :  { %1716 = vmatpush3.msra.mxu0 %v2422_v20 }
  0x7e   :  { %1717 = vmatprep.subr.mxu0 %v2426_v21 }
  0x7f   :  { %1718 = vmatpush3.msra.mxu0 %v2430_v22 }
  0x80   :  { %1719 = vmatprep.subr.mxu0 %v2434_v23 }
  0x81   :  { %1720 = vmatpush3.msra.mxu0 %v2438_v24 }
  0x82   :  { %1721 = vmatprep.subr.mxu0 %v2442_v25 }
  0x83   :  { %1722 = vmatpush3.msra.mxu0 %v2446_v26 }
  0x84   :  { %1723 = vmatprep.subr.mxu0 %v2450_v27 }
  0x85   :  { %1724 = vmatpush3.msra.mxu0 %v2454_v28 }
  0x86   :  { %1725 = vmatprep.subr.mxu0 %v2458_v29 }
  0x87   :  { %1726 = vmatpush3.msra.mxu0 %v2462_v30 }
  0x88   :  { %1727 = vmatprep.subr.mxu0 %v2466_v31 }
  0x89   :  { %1728 = vmatpush3.msra.mxu0 %v2470_v32 }
  0x8a   :  { %1767 = vmatprep.subr.mxu0 %v2351_v1 }
 0x129   :  { %v1659_v33 = vpop.f32.mrf.mxu0 }
 0x12b   :  { %v1660_v35 = vpop.f32.mrf.mxu0 }
 0x12c   :  { %v1661_v36 = vadd.f32 %v1660_v35, %v1659_v33 }
 0x12e   :  { %v216_v37 = vadd.f32 %v1661_v36, %v2517_v34 }
 0x130   :  { %2057 = vtanh.f32 %v216_v37 }
 0x13d   :  { %v2058_v47 = vpop.eup %2057 }
 0x13e   :  { %v220_v48 = vsel %vm115_vm0, %v113_v42, %v2058_v47 }
 0x13f   :  { %v230_v49 = vrot.slane %v220_v48, %v2526_v44  ;;  %v234_v48 = vld [vmem:[#allocation5 + $0x1] sm:$0x1] }
 0x140   :  { %vm235_vm8 = vcmp.gt.s32.totalorder %v234_v48, 0 }
 0x141   :  { %v2535_v50 = vsel %vm225_vm1, %v230_v49, 0.0  ;;  %v2537_v51 = vsel %vm226_vm2, %v230_v49, 0.0  ;;  %v233_v49 = vld [vmem:[#allocation2 + $0x1] sm:$0x1] }
 0x142   :  { %v262_v52 = vsel %vm260_vm3, %v2535_v50, 0.0  ;;  %v263_v53 = vsel %vm261_vm4, %v2537_v51, 0.0  ;;  %v245_v54 = vsel %vm243_vm5, %v2535_v50, 0.0  ;;  %v246_v55 = vsel %vm244_vm6, %v2537_v51, 0.0 }
 0x143   :  { %v264_v56 = vsel %vm247_vm7, %v263_v53, 0.0  ;;  %v248_v57 = vsel %vm247_vm7, %v246_v55, 0.0  ;;  %v1598_v53 = vld [vmem:[#allocation10 + $0x2] ss:$0 sm:$0xff] }
 0x144   :  { %v265_v58 = vadd.f32 %v264_v56, %v262_v52  ;;  %v249_v59 = vadd.f32 %v248_v57, %v245_v54  ;;  %v1596_v52 = vld [vmem:[#allocation7 + $0x1] ss:$0 sm:$0xff]  ;;  %v1597_v54 = vld [vmem:[#allocation8 + $0x2] ss:$0 sm:$0xff]  ;;  %vm382_vm11 = vcmp.eq.s32.totalorder %v2520_v39, %v1598_v53  ;;  %vm383_vm12 = vcmp.eq.s32.totalorder %v2523_v41, %v1598_v53 }
 0x145   :  { %vm348_vm9 = vcmp.eq.s32.totalorder %v2520_v39, %v1596_v52  ;;  %vm349_vm10 = vcmp.eq.s32.totalorder %v2523_v41, %v1596_v52  ;;  %vm366_vm13 = vcmp.eq.s32.totalorder %v2520_v39, %v1597_v54  ;;  %vm367_vm14 = vcmp.eq.s32.totalorder %v2523_v41, %v1597_v54 }
 0x146   :  { %v266_v60 = vrot.slane %v265_v58, 4  ;;  %v250_v61 = vrot.slane %v249_v59, 4 }
 0x148   :  { %v267_v62 = vadd.f32 %v266_v60, %v265_v58  ;;  %v251_v63 = vadd.f32 %v250_v61, %v249_v59 }
 0x14a   :  { %v268_v0 = vrot.slane %v267_v62, 2  ;;  %v252_v33 = vrot.slane %v251_v63, 2 }
 0x14c   :  { %v269_v35 = vadd.f32 %v268_v0, %v267_v62  ;;  %v253_v36 = vadd.f32 %v252_v33, %v251_v63 }
 0x14e   :  { %v270_v37 = vrot.slane %v269_v35, 1  ;;  %v254_v38 = vrot.slane %v253_v36, 1 }
 0x150   :  { %v271_v40 = vadd.f32 %v270_v37, %v269_v35  ;;  %v255_v42 = vadd.f32 %v254_v38, %v253_v36 }
 0x152   :  { %336 = vmatprep.mubr.f32.mxu1 %v271_v40 }
 0x153   :  { %337 = vmatmul.mubr.f32.vlgmr.msra.gmra.mxu1 %v255_v42 }
 0x154   :  { %1733 = vmatpush3.msra.mxu1 %v2353_v2 }
 0x155   :  { %1734 = vmatprep.subr.mxu1 %v2355_v3 }
 0x156   :  { %1735 = vmatpush3.msra.mxu1 %v2358_v4 }
 0x157   :  { %1736 = vmatprep.subr.mxu1 %v2362_v5 }
 0x158   :  { %1737 = vmatpush3.msra.mxu1 %v2366_v6 }
 0x159   :  { %1738 = vmatprep.subr.mxu1 %v2370_v7 }
 0x15a   :  { %1739 = vmatpush3.msra.mxu1 %v2374_v8 }
 0x15b   :  { %1740 = vmatprep.subr.mxu1 %v2378_v9 }
 0x15c   :  { %1741 = vmatpush3.msra.mxu1 %v2382_v10 }
 0x15d   :  { %1742 = vmatprep.subr.mxu1 %v2386_v11 }
 0x15e   :  { %1743 = vmatpush3.msra.mxu1 %v2390_v12 }
 0x15f   :  { %1744 = vmatprep.subr.mxu1 %v2394_v13 }
 0x160   :  { %1745 = vmatpush3.msra.mxu1 %v2398_v14 }
 0x161   :  { %1746 = vmatprep.subr.mxu1 %v2402_v15 }
 0x162   :  { %1747 = vmatpush3.msra.mxu1 %v2406_v16 }
 0x163   :  { %1748 = vmatprep.subr.mxu1 %v2410_v17 }
 0x164   :  { %1749 = vmatpush3.msra.mxu1 %v2414_v18 }
 0x165   :  { %1750 = vmatprep.subr.mxu1 %v2418_v19 }
 0x166   :  { %1751 = vmatpush3.msra.mxu1 %v2422_v20 }
 0x167   :  { %1752 = vmatprep.subr.mxu1 %v2426_v21 }
 0x168   :  { %1753 = vmatpush3.msra.mxu1 %v2430_v22 }
 0x169   :  { %1754 = vmatprep.subr.mxu1 %v2434_v23 }
 0x16a   :  { %1755 = vmatpush3.msra.mxu1 %v2438_v24 }
 0x16b   :  { %1756 = vmatprep.subr.mxu1 %v2442_v25 }
 0x16c   :  { %1757 = vmatpush3.msra.mxu1 %v2446_v26 }
 0x16d   :  { %1758 = vmatprep.subr.mxu1 %v2450_v27 }
 0x16e   :  { %1759 = vmatpush3.msra.mxu1 %v2454_v28 }
 0x16f   :  { %1760 = vmatprep.subr.mxu1 %v2458_v29 }
 0x170   :  { %1761 = vmatpush3.msra.mxu1 %v2462_v30 }
 0x171   :  { %1762 = vmatprep.subr.mxu1 %v2466_v31 }
 0x172   :  { %1763 = vmatpush3.msra.mxu1 %v2470_v32 }
 0x173   :  { %1802 = vmatprep.subr.mxu1 %v2351_v1 }
 0x213   :  { %v1694_v43 = vpop.f32.mrf.mxu1 }
 0x215   :  { %v1695_v45 = vpop.f32.mrf.mxu1 }
 0x216   :  { %v1696_v46 = vadd.f32 %v1695_v45, %v1694_v43 }
 0x218   :  { %v339_v47 = vadd.f32 %v1696_v46, %v2517_v34 }
 0x21a   :  { %2059 = vtanh.f32 %v339_v47 }
 0x227   :  { %v2060_v55 = vpop.eup %2059 }
 0x228   :  { %v343_v56 = vsel %vm235_vm8, %v233_v49, %v2060_v55 }
 0x229   :  { %v353_v57 = vrot.slane %v343_v56, %v2526_v44  ;;  %v357_v56 = vld [vmem:[#allocation5 + $0x2] sm:$0x1] }
 0x22a   :  { %vm358_vm15 = vcmp.gt.s32.totalorder %v357_v56, 0 }
 0x22b   :  { %v2586_v58 = vsel %vm348_vm9, %v353_v57, %v2535_v50  ;;  %v2589_v59 = vsel %vm349_vm10, %v353_v57, %v2537_v51  ;;  %v356_v57 = vld [vmem:[#allocation2 + $0x2] sm:$0x1] }
 0x22c   :  { %v384_v60 = vsel %vm382_vm11, %v2586_v58, 0.0  ;;  %v385_v61 = vsel %vm383_vm12, %v2589_v59, 0.0  ;;  %v368_v62 = vsel %vm366_vm13, %v2586_v58, 0.0  ;;  %v369_v63 = vsel %vm367_vm14, %v2589_v59, 0.0 }
 0x22d   :  { %v386_v0 = vsel %vm247_vm7, %v385_v61, 0.0  ;;  %v370_v33 = vsel %vm247_vm7, %v369_v63, 0.0  ;;  %v1601_v61 = vld [vmem:[#allocation10 + $0x3] ss:$0 sm:$0xff] }
 0x22e   :  { %v387_v35 = vadd.f32 %v386_v0, %v384_v60  ;;  %v371_v36 = vadd.f32 %v370_v33, %v368_v62  ;;  %v1599_v60 = vld [vmem:[#allocation7 + $0x2] ss:$0 sm:$0xff]  ;;  %v1600_v62 = vld [vmem:[#allocation8 + $0x3] ss:$0 sm:$0xff]  ;;  %vm504_vm2 = vcmp.eq.s32.totalorder %v2520_v39, %v1601_v61  ;;  %vm505_vm3 = vcmp.eq.s32.totalorder %v2523_v41, %v1601_v61 }
 0x22f   :  { %vm470_vm0 = vcmp.eq.s32.totalorder %v2520_v39, %v1599_v60  ;;  %vm471_vm1 = vcmp.eq.s32.totalorder %v2523_v41, %v1599_v60  ;;  %vm488_vm4 = vcmp.eq.s32.totalorder %v2520_v39, %v1600_v62  ;;  %vm489_vm5 = vcmp.eq.s32.totalorder %v2523_v41, %v1600_v62 }
 0x230   :  { %v388_v37 = vrot.slane %v387_v35, 4  ;;  %v372_v50 = vrot.slane %v371_v36, 4 }
 0x232   :  { %v389_v38 = vadd.f32 %v388_v37, %v387_v35  ;;  %v373_v40 = vadd.f32 %v372_v50, %v371_v36 }
 0x234   :  { %v390_v51 = vrot.slane %v389_v38, 2  ;;  %v374_v42 = vrot.slane %v373_v40, 2 }
 0x236   :  { %v391_v43 = vadd.f32 %v390_v51, %v389_v38  ;;  %v375_v45 = vadd.f32 %v374_v42, %v373_v40 }
 0x238   :  { %v392_v46 = vrot.slane %v391_v43, 1  ;;  %v376_v47 = vrot.slane %v375_v45, 1 }
 0x23a   :  { %v393_v48 = vadd.f32 %v392_v46, %v391_v43  ;;  %v377_v49 = vadd.f32 %v376_v47, %v375_v45 }
 0x23c   :  { %458 = vmatprep.mubr.f32.mxu0 %v393_v48 }
 0x23d   :  { %459 = vmatmul.mubr.f32.vlgmr.msra.gmra.mxu0 %v377_v49 }
 0x23e   :  { %1768 = vmatpush3.msra.mxu0 %v2353_v2 }
 0x23f   :  { %1769 = vmatprep.subr.mxu0 %v2355_v3 }
 0x240   :  { %1770 = vmatpush3.msra.mxu0 %v2358_v4 }
 0x241   :  { %1771 = vmatprep.subr.mxu0 %v2362_v5 }
 0x242   :  { %1772 = vmatpush3.msra.mxu0 %v2366_v6 }
 0x243   :  { %1773 = vmatprep.subr.mxu0 %v2370_v7 }
 0x244   :  { %1774 = vmatpush3.msra.mxu0 %v2374_v8 }
 0x245   :  { %1775 = vmatprep.subr.mxu0 %v2378_v9 }
 0x246   :  { %1776 = vmatpush3.msra.mxu0 %v2382_v10 }
 0x247   :  { %1777 = vmatprep.subr.mxu0 %v2386_v11 }
 0x248   :  { %1778 = vmatpush3.msra.mxu0 %v2390_v12 }
 0x249   :  { %1779 = vmatprep.subr.mxu0 %v2394_v13 }
 0x24a   :  { %1780 = vmatpush3.msra.mxu0 %v2398_v14 }
 0x24b   :  { %1781 = vmatprep.subr.mxu0 %v2402_v15 }
 0x24c   :  { %1782 = vmatpush3.msra.mxu0 %v2406_v16 }
 0x24d   :  { %1783 = vmatprep.subr.mxu0 %v2410_v17 }
 0x24e   :  { %1784 = vmatpush3.msra.mxu0 %v2414_v18 }
 0x24f   :  { %1785 = vmatprep.subr.mxu0 %v2418_v19 }
 0x250   :  { %1786 = vmatpush3.msra.mxu0 %v2422_v20 }
 0x251   :  { %1787 = vmatprep.subr.mxu0 %v2426_v21 }
 0x252   :  { %1788 = vmatpush3.msra.mxu0 %v2430_v22 }
 0x253   :  { %1789 = vmatprep.subr.mxu0 %v2434_v23 }
 0x254   :  { %1790 = vmatpush3.msra.mxu0 %v2438_v24 }
 0x255   :  { %1791 = vmatprep.subr.mxu0 %v2442_v25 }
 0x256   :  { %1792 = vmatpush3.msra.mxu0 %v2446_v26 }
 0x257   :  { %1793 = vmatprep.subr.mxu0 %v2450_v27 }
 0x258   :  { %1794 = vmatpush3.msra.mxu0 %v2454_v28 }
 0x259   :  { %1795 = vmatprep.subr.mxu0 %v2458_v29 }
 0x25a   :  { %1796 = vmatpush3.msra.mxu0 %v2462_v30 }
 0x25b   :  { %1797 = vmatprep.subr.mxu0 %v2466_v31 }
 0x25c   :  { %1798 = vmatpush3.msra.mxu0 %v2470_v32 }
 0x25d   :  { %1837 = vmatprep.subr.mxu0 %v2351_v1 }
 0x2fd   :  { %v1729_v52 = vpop.f32.mrf.mxu0 }
 0x2ff   :  { %v1730_v53 = vpop.f32.mrf.mxu0 }
 0x300   :  { %v1731_v54 = vadd.f32 %v1730_v53, %v1729_v52 }
 0x302   :  { %v461_v55 = vadd.f32 %v1731_v54, %v2517_v34 }
 0x304   :  { %2061 = vtanh.f32 %v461_v55 }
 0x311   :  { %v2062_v63 = vpop.eup %2061 }
 0x312   :  { %v465_v0 = vsel %vm358_vm15, %v356_v57, %v2062_v63 }
 0x313   :  { %v475_v33 = vrot.slane %v465_v0, %v2526_v44  ;;  %v479_v0 = vld [vmem:[#allocation5 + $0x3] sm:$0x1] }
 0x314   :  { %vm480_vm6 = vcmp.gt.s32.totalorder %v479_v0, 0 }
 0x315   :  { %v2638_v35 = vsel %vm470_vm0, %v475_v33, %v2586_v58  ;;  %v2641_v36 = vsel %vm471_vm1, %v475_v33, %v2589_v59  ;;  %v478_v33 = vld [vmem:[#allocation2 + $0x3] sm:$0x1] }
 0x316   :  { %v506_v37 = vsel %vm504_vm2, %v2638_v35, 0.0  ;;  %v507_v50 = vsel %vm505_vm3, %v2641_v36, 0.0  ;;  %v490_v38 = vsel %vm488_vm4, %v2638_v35, 0.0  ;;  %v491_v40 = vsel %vm489_vm5, %v2641_v36, 0.0 }
 0x317   :  { %v508_v51 = vsel %vm247_vm7, %v507_v50, 0.0  ;;  %v492_v42 = vsel %vm247_vm7, %v491_v40, 0.0  ;;  %v1604_v50 = vld [vmem:[#allocation10 + $0x4] ss:$0 sm:$0xff] }
 0x318   :  { %v509_v43 = vadd.f32 %v508_v51, %v506_v37  ;;  %v493_v45 = vadd.f32 %v492_v42, %v490_v38  ;;  %v1602_v37 = vld [vmem:[#allocation7 + $0x3] ss:$0 sm:$0xff]  ;;  %v1603_v38 = vld [vmem:[#allocation8 + $0x4] ss:$0 sm:$0xff]  ;;  %vm626_vm10 = vcmp.eq.s32.totalorder %v2520_v39, %v1604_v50  ;;  %vm627_vm11 = vcmp.eq.s32.totalorder %v2523_v41, %v1604_v50 }
 0x319   :  { %vm592_vm8 = vcmp.eq.s32.totalorder %v2520_v39, %v1602_v37  ;;  %vm593_vm9 = vcmp.eq.s32.totalorder %v2523_v41, %v1602_v37  ;;  %vm610_vm12 = vcmp.eq.s32.totalorder %v2520_v39, %v1603_v38  ;;  %vm611_vm13 = vcmp.eq.s32.totalorder %v2523_v41, %v1603_v38 }
 0x31a   :  { %v510_v46 = vrot.slane %v509_v43, 4  ;;  %v494_v58 = vrot.slane %v493_v45, 4 }
 0x31c   :  { %v511_v47 = vadd.f32 %v510_v46, %v509_v43  ;;  %v495_v48 = vadd.f32 %v494_v58, %v493_v45 }
 0x31e   :  { %v512_v59 = vrot.slane %v511_v47, 2  ;;  %v496_v49 = vrot.slane %v495_v48, 2 }
 0x320   :  { %v513_v52 = vadd.f32 %v512_v59, %v511_v47  ;;  %v497_v53 = vadd.f32 %v496_v49, %v495_v48 }
 0x322   :  { %v514_v54 = vrot.slane %v513_v52, 1  ;;  %v498_v55 = vrot.slane %v497_v53, 1 }
 0x324   :  { %v515_v56 = vadd.f32 %v514_v54, %v513_v52  ;;  %v499_v57 = vadd.f32 %v498_v55, %v497_v53 }
 0x326   :  { %580 = vmatprep.mubr.f32.mxu1 %v515_v56 }
 0x327   :  { %581 = vmatmul.mubr.f32.vlgmr.msra.gmra.mxu1 %v499_v57 }
 0x328   :  { %1803 = vmatpush3.msra.mxu1 %v2353_v2 }
 0x329   :  { %1804 = vmatprep.subr.mxu1 %v2355_v3 }
 0x32a   :  { %1805 = vmatpush3.msra.mxu1 %v2358_v4 }
 0x32b   :  { %1806 = vmatprep.subr.mxu1 %v2362_v5 }
 0x32c   :  { %1807 = vmatpush3.msra.mxu1 %v2366_v6 }
 0x32d   :  { %1808 = vmatprep.subr.mxu1 %v2370_v7 }
 0x32e   :  { %1809 = vmatpush3.msra.mxu1 %v2374_v8 }
 0x32f   :  { %1810 = vmatprep.subr.mxu1 %v2378_v9 }
 0x330   :  { %1811 = vmatpush3.msra.mxu1 %v2382_v10 }
 0x331   :  { %1812 = vmatprep.subr.mxu1 %v2386_v11 }
 0x332   :  { %1813 = vmatpush3.msra.mxu1 %v2390_v12 }
 0x333   :  { %1814 = vmatprep.subr.mxu1 %v2394_v13 }
 0x334   :  { %1815 = vmatpush3.msra.mxu1 %v2398_v14 }
 0x335   :  { %1816 = vmatprep.subr.mxu1 %v2402_v15 }
 0x336   :  { %1817 = vmatpush3.msra.mxu1 %v2406_v16 }
 0x337   :  { %1818 = vmatprep.subr.mxu1 %v2410_v17 }
 0x338   :  { %1819 = vmatpush3.msra.mxu1 %v2414_v18 }
 0x339   :  { %1820 = vmatprep.subr.mxu1 %v2418_v19 }
 0x33a   :  { %1821 = vmatpush3.msra.mxu1 %v2422_v20 }
 0x33b   :  { %1822 = vmatprep.subr.mxu1 %v2426_v21 }
 0x33c   :  { %1823 = vmatpush3.msra.mxu1 %v2430_v22 }
 0x33d   :  { %1824 = vmatprep.subr.mxu1 %v2434_v23 }
 0x33e   :  { %1825 = vmatpush3.msra.mxu1 %v2438_v24 }
 0x33f   :  { %1826 = vmatprep.subr.mxu1 %v2442_v25 }
 0x340   :  { %1827 = vmatpush3.msra.mxu1 %v2446_v26 }
 0x341   :  { %1828 = vmatprep.subr.mxu1 %v2450_v27 }
 0x342   :  { %1829 = vmatpush3.msra.mxu1 %v2454_v28 }
 0x343   :  { %1830 = vmatprep.subr.mxu1 %v2458_v29 }
 0x344   :  { %1831 = vmatpush3.msra.mxu1 %v2462_v30 }
 0x345   :  { %1832 = vmatprep.subr.mxu1 %v2466_v31 }
 0x346   :  { %1833 = vmatpush3.msra.mxu1 %v2470_v32 }
 0x347   :  { %1872 = vmatprep.subr.mxu1 %v2351_v1 }
 0x3e7   :  { %v1764_v60 = vpop.f32.mrf.mxu1 }
 0x3e9   :  { %v1765_v61 = vpop.f32.mrf.mxu1 }
 0x3ea   :  { %v1766_v62 = vadd.f32 %v1765_v61, %v1764_v60 }
 0x3ec   :  { %v583_v63 = vadd.f32 %v1766_v62, %v2517_v34 }
 0x3ee   :  { %2063 = vtanh.f32 %v583_v63 }
 0x3fb   :  { %v2064_v40 = vpop.eup %2063 }
 0x3fc   :  { %v587_v51 = vsel %vm480_vm6, %v478_v33, %v2064_v40 }
 0x3fd   :  { %v597_v42 = vrot.slane %v587_v51, %v2526_v44  ;;  %v601_v51 = vld [vmem:[#allocation5 + $0x4] sm:$0x1] }
 0x3fe   :  { %vm602_vm14 = vcmp.gt.s32.totalorder %v601_v51, 0 }
 0x3ff   :  { %v2690_v43 = vsel %vm592_vm8, %v597_v42, %v2638_v35  ;;  %v2693_v45 = vsel %vm593_vm9, %v597_v42, %v2641_v36  ;;  %v600_v42 = vld [vmem:[#allocation2 + $0x4] sm:$0x1] }
 0x400   :  { %v628_v46 = vsel %vm626_vm10, %v2690_v43, 0.0  ;;  %v629_v58 = vsel %vm627_vm11, %v2693_v45, 0.0  ;;  %v612_v47 = vsel %vm610_vm12, %v2690_v43, 0.0  ;;  %v613_v48 = vsel %vm611_vm13, %v2693_v45, 0.0 }
 0x401   :  { %v630_v59 = vsel %vm247_vm7, %v629_v58, 0.0  ;;  %v614_v49 = vsel %vm247_vm7, %v613_v48, 0.0  ;;  %v1607_v58 = vld [vmem:[#allocation10 + $0x5] ss:$0 sm:$0xff] }
 0x402   :  { %v631_v52 = vadd.f32 %v630_v59, %v628_v46  ;;  %v615_v53 = vadd.f32 %v614_v49, %v612_v47  ;;  %v1605_v46 = vld [vmem:[#allocation7 + $0x4] ss:$0 sm:$0xff]  ;;  %v1606_v47 = vld [vmem:[#allocation8 + $0x5] ss:$0 sm:$0xff]  ;;  %vm748_vm1 = vcmp.eq.s32.totalorder %v2520_v39, %v1607_v58  ;;  %vm749_vm2 = vcmp.eq.s32.totalorder %v2523_v41, %v1607_v58 }
 0x403   :  { %vm714_vm15 = vcmp.eq.s32.totalorder %v2520_v39, %v1605_v46  ;;  %vm715_vm0 = vcmp.eq.s32.totalorder %v2523_v41, %v1605_v46  ;;  %vm732_vm3 = vcmp.eq.s32.totalorder %v2520_v39, %v1606_v47  ;;  %vm733_vm4 = vcmp.eq.s32.totalorder %v2523_v41, %v1606_v47 }
 0x404   :  { %v632_v54 = vrot.slane %v631_v52, 4  ;;  %v616_v35 = vrot.slane %v615_v53, 4 }
 0x406   :  { %v633_v55 = vadd.f32 %v632_v54, %v631_v52  ;;  %v617_v56 = vadd.f32 %v616_v35, %v615_v53 }
 0x408   :  { %v634_v36 = vrot.slane %v633_v55, 2  ;;  %v618_v57 = vrot.slane %v617_v56, 2 }
 0x40a   :  { %v635_v60 = vadd.f32 %v634_v36, %v633_v55  ;;  %v619_v61 = vadd.f32 %v618_v57, %v617_v56 }
 0x40c   :  { %v636_v62 = vrot.slane %v635_v60, 1  ;;  %v620_v63 = vrot.slane %v619_v61, 1 }
 0x40e   :  { %v637_v0 = vadd.f32 %v636_v62, %v635_v60  ;;  %v621_v33 = vadd.f32 %v620_v63, %v619_v61 }
 0x410   :  { %702 = vmatprep.mubr.f32.mxu0 %v637_v0 }
 0x411   :  { %703 = vmatmul.mubr.f32.vlgmr.msra.gmra.mxu0 %v621_v33 }
 0x412   :  { %1838 = vmatpush3.msra.mxu0 %v2353_v2 }
 0x413   :  { %1839 = vmatprep.subr.mxu0 %v2355_v3 }
 0x414   :  { %1840 = vmatpush3.msra.mxu0 %v2358_v4 }
 0x415   :  { %1841 = vmatprep.subr.mxu0 %v2362_v5 }
 0x416   :  { %1842 = vmatpush3.msra.mxu0 %v2366_v6 }
 0x417   :  { %1843 = vmatprep.subr.mxu0 %v2370_v7 }
 0x418   :  { %1844 = vmatpush3.msra.mxu0 %v2374_v8 }
 0x419   :  { %1845 = vmatprep.subr.mxu0 %v2378_v9 }
 0x41a   :  { %1846 = vmatpush3.msra.mxu0 %v2382_v10 }
 0x41b   :  { %1847 = vmatprep.subr.mxu0 %v2386_v11 }
 0x41c   :  { %1848 = vmatpush3.msra.mxu0 %v2390_v12 }
 0x41d   :  { %1849 = vmatprep.subr.mxu0 %v2394_v13 }
 0x41e   :  { %1850 = vmatpush3.msra.mxu0 %v2398_v14 }
 0x41f   :  { %1851 = vmatprep.subr.mxu0 %v2402_v15 }
 0x420   :  { %1852 = vmatpush3.msra.mxu0 %v2406_v16 }
 0x421   :  { %1853 = vmatprep.subr.mxu0 %v2410_v17 }
 0x422   :  { %1854 = vmatpush3.msra.mxu0 %v2414_v18 }
 0x423   :  { %1855 = vmatprep.subr.mxu0 %v2418_v19 }
 0x424   :  { %1856 = vmatpush3.msra.mxu0 %v2422_v20 }
 0x425   :  { %1857 = vmatprep.subr.mxu0 %v2426_v21 }
 0x426   :  { %1858 = vmatpush3.msra.mxu0 %v2430_v22 }
 0x427   :  { %1859 = vmatprep.subr.mxu0 %v2434_v23 }
 0x428   :  { %1860 = vmatpush3.msra.mxu0 %v2438_v24 }
 0x429   :  { %1861 = vmatprep.subr.mxu0 %v2442_v25 }
 0x42a   :  { %1862 = vmatpush3.msra.mxu0 %v2446_v26 }
 0x42b   :  { %1863 = vmatprep.subr.mxu0 %v2450_v27 }
 0x42c   :  { %1864 = vmatpush3.msra.mxu0 %v2454_v28 }
 0x42d   :  { %1865 = vmatprep.subr.mxu0 %v2458_v29 }
 0x42e   :  { %1866 = vmatpush3.msra.mxu0 %v2462_v30 }
 0x42f   :  { %1867 = vmatprep.subr.mxu0 %v2466_v31 }
 0x430   :  { %1868 = vmatpush3.msra.mxu0 %v2470_v32 }
 0x431   :  { %1907 = vmatprep.subr.mxu0 %v2351_v1 }
 0x4d1   :  { %v1799_v37 = vpop.f32.mrf.mxu0 }
 0x4d3   :  { %v1800_v50 = vpop.f32.mrf.mxu0 }
 0x4d4   :  { %v1801_v38 = vadd.f32 %v1800_v50, %v1799_v37 }
 0x4d6   :  { %v705_v40 = vadd.f32 %v1801_v38, %v2517_v34 }
 0x4d8   :  { %2065 = vtanh.f32 %v705_v40 }
 0x4e5   :  { %v2066_v48 = vpop.eup %2065 }
 0x4e6   :  { %v709_v59 = vsel %vm602_vm14, %v600_v42, %v2066_v48 }
 0x4e7   :  { %v719_v1 = vrot.slane %v709_v59, %v2526_v44 }
 0x4e9   :  { %v2742_v49 = vsel %vm714_vm15, %v719_v1, %v2690_v43  ;;  %v2745_v52 = vsel %vm715_vm0, %v719_v1, %v2693_v45 }
 0x4ea   :  { %v750_v53 = vsel %vm748_vm1, %v2742_v49, 0.0  ;;  %v751_v54 = vsel %vm749_vm2, %v2745_v52, 0.0  ;;  %v734_v35 = vsel %vm732_vm3, %v2742_v49, 0.0  ;;  %v735_v55 = vsel %vm733_vm4, %v2745_v52, 0.0 }
 0x4eb   :  { %v752_v56 = vsel %vm247_vm7, %v751_v54, 0.0  ;;  %v736_v36 = vsel %vm247_vm7, %v735_v55, 0.0  ;;  %v2810_v54 = vld [vmem:[#allocation11 + $0xf0] sm:$0xff]  ;;  %v2816_v55 = vld [vmem:[#allocation11 + $0xe8] sm:$0xff] }
 0x4ec   :  { %v753_v57 = vadd.f32 %v752_v56, %v750_v53  ;;  %v737_v60 = vadd.f32 %v736_v36, %v734_v35  ;;  %v2807_v53 = vld [vmem:[#allocation11 + $0x78] sm:$0xff]  ;;  %v2813_v35 = vld [vmem:[#allocation11 + $0x70] sm:$0xff]  ;;  %v2819_v56 = vld [vmem:[#allocation11 + $0x68] sm:$0xff] }
 0x4ed   :  { %v2822_v36 = vld [vmem:[#allocation11 + $0xe0] sm:$0xff] }
 0x4ee   :  { %v754_v61 = vrot.slane %v753_v57, 4  ;;  %v738_v43 = vrot.slane %v737_v60, 4 }
 0x4f0   :  { %v755_v62 = vadd.f32 %v754_v61, %v753_v57  ;;  %v739_v63 = vadd.f32 %v738_v43, %v737_v60  ;;  %v2825_v57 = vld [vmem:[#allocation11 + $0x60] sm:$0xff]  ;;  %v2828_v60 = vld [vmem:[#allocation11 + $0xd8] sm:$0xff]  ;;  %v2834_v43 = vld [vmem:[#allocation11 + $0xd0] sm:$0xff] }
 0x4f1   :  { %v2831_v61 = vld [vmem:[#allocation11 + $0x58] sm:$0xff] }
 0x4f2   :  { %v756_v45 = vrot.slane %v755_v62, 2  ;;  %v740_v0 = vrot.slane %v739_v63, 2 }
 0x4f4   :  { %v757_v33 = vadd.f32 %v756_v45, %v755_v62  ;;  %v741_v37 = vadd.f32 %v740_v0, %v739_v63  ;;  %v2837_v62 = vld [vmem:[#allocation11 + $0x50] sm:$0xff]  ;;  %v2840_v63 = vld [vmem:[#allocation11 + $0xc8] sm:$0xff]  ;;  %v2846_v0 = vld [vmem:[#allocation11 + $0xc0] sm:$0xff] }
 0x4f5   :  { %v2843_v45 = vld [vmem:[#allocation11 + $0x48] sm:$0xff] }
 0x4f6   :  { %v758_v50 = vrot.slane %v757_v33, 1  ;;  %v742_v38 = vrot.slane %v741_v37, 1 }
 0x4f8   :  { %v759_v40 = vadd.f32 %v758_v50, %v757_v33  ;;  %v743_v51 = vadd.f32 %v742_v38, %v741_v37  ;;  %v2849_v33 = vld [vmem:[#allocation11 + $0x40] sm:$0xff]  ;;  %v2852_v37 = vld [vmem:[#allocation11 + $0xb8] sm:$0xff]  ;;  %v2858_v38 = vld [vmem:[#allocation11 + $0xb0] sm:$0xff] }
 0x4f9   :  { %v2855_v50 = vld [vmem:[#allocation11 + $0x38] sm:$0xff] }
 0x4fa   :  { %824 = vmatprep.mubr.f32.mxu1 %v759_v40  ;;  %v2861_v40 = vld [vmem:[#allocation11 + $0x30] sm:$0xff] }
 0x4fb   :  { %825 = vmatmul.mubr.f32.vlgmr.msra.gmra.mxu1 %v743_v51  ;;  %v2864_v51 = vld [vmem:[#allocation11 + $0xa8] sm:$0xff] }
 0x4fc   :  { %1873 = vmatpush3.msra.mxu1 %v2353_v2  ;;  %v2784_v2 = vld [vmem:[#allocation11 + $0xf8] sm:$0xff] }
 0x4fd   :  { %1874 = vmatprep.subr.mxu1 %v2355_v3 }
 0x4fe   :  { %1875 = vmatpush3.msra.mxu1 %v2358_v4 }
 0x4ff   :  { %1876 = vmatprep.subr.mxu1 %v2362_v5 }
 0x500   :  { %1877 = vmatpush3.msra.mxu1 %v2366_v6 }
 0x501   :  { %1878 = vmatprep.subr.mxu1 %v2370_v7  ;;  %v723_v7 = vld [vmem:[#allocation5 + $0x5] sm:$0x1] }
 0x502   :  { %1879 = vmatpush3.msra.mxu1 %v2374_v8  ;;  %v722_v8 = vld [vmem:[#allocation2 + $0x5] sm:$0x1]  ;;  %vm724_vm5 = vcmp.gt.s32.totalorder %v723_v7, 0  ;;  %v2879_v7 = vld [vmem:[#allocation11 + $0x18] sm:$0xff] }
 0x503   :  { %1880 = vmatprep.subr.mxu1 %v2378_v9  ;;  %v1608_v9 = vld [vmem:[#allocation7 + $0x5] ss:$0 sm:$0xff] }
 0x504   :  { %1881 = vmatpush3.msra.mxu1 %v2382_v10  ;;  %v1610_v10 = vld [vmem:[#allocation10 + $0x6] ss:$0 sm:$0xff]  ;;  %vm836_vm6 = vcmp.eq.s32.totalorder %v2520_v39, %v1608_v9  ;;  %vm837_vm8 = vcmp.eq.s32.totalorder %v2523_v41, %v1608_v9 }
 0x505   :  { %1882 = vmatprep.subr.mxu1 %v2386_v11  ;;  %v1609_v11 = vld [vmem:[#allocation8 + $0x6] ss:$0 sm:$0xff]  ;;  %vm870_vm9 = vcmp.eq.s32.totalorder %v2520_v39, %v1610_v10  ;;  %vm871_vm10 = vcmp.eq.s32.totalorder %v2523_v41, %v1610_v10 }
 0x506   :  { %1883 = vmatpush3.msra.mxu1 %v2390_v12  ;;  %vm854_vm11 = vcmp.eq.s32.totalorder %v2520_v39, %v1609_v11  ;;  %vm855_vm12 = vcmp.eq.s32.totalorder %v2523_v41, %v1609_v11 }
 0x507   :  { %1884 = vmatprep.subr.mxu1 %v2394_v13 }
 0x508   :  { %1885 = vmatpush3.msra.mxu1 %v2398_v14 }
 0x509   :  { %1886 = vmatprep.subr.mxu1 %v2402_v15 }
 0x50a   :  { %1887 = vmatpush3.msra.mxu1 %v2406_v16 }
 0x50b   :  { %1888 = vmatprep.subr.mxu1 %v2410_v17 }
 0x50c   :  { %1889 = vmatpush3.msra.mxu1 %v2414_v18 }
 0x50d   :  { %1890 = vmatprep.subr.mxu1 %v2418_v19 }
 0x50e   :  { %1891 = vmatpush3.msra.mxu1 %v2422_v20 }
 0x50f   :  { %1892 = vmatprep.subr.mxu1 %v2426_v21 }
 0x510   :  { %1893 = vmatpush3.msra.mxu1 %v2430_v22 }
 0x511   :  { %1894 = vmatprep.subr.mxu1 %v2434_v23 }
 0x512   :  { %1895 = vmatpush3.msra.mxu1 %v2438_v24 }
 0x513   :  { %1896 = vmatprep.subr.mxu1 %v2442_v25 }
 0x514   :  { %1897 = vmatpush3.msra.mxu1 %v2446_v26 }
 0x515   :  { %1898 = vmatprep.subr.mxu1 %v2450_v27 }
 0x516   :  { %1899 = vmatpush3.msra.mxu1 %v2454_v28 }
 0x517   :  { %1900 = vmatprep.subr.mxu1 %v2458_v29 }
 0x518   :  { %1901 = vmatpush3.msra.mxu1 %v2462_v30 }
 0x519   :  { %1902 = vmatprep.subr.mxu1 %v2466_v31 }
 0x51a   :  { %1903 = vmatpush3.msra.mxu1 %v2470_v32 }
 0x51b   :  { %1942 = vmatprep.subr.mxu1 %v2784_v2 }
 0x5bb   :  { %v1834_v3 = vpop.f32.mrf.mxu1 }
 0x5bd   :  { %v1835_v4 = vpop.f32.mrf.mxu1 }
 0x5be   :  { %v1836_v5 = vadd.f32 %v1835_v4, %v1834_v3  ;;  %v2867_v3 = vld [vmem:[#allocation11 + $0x28] sm:$0xff]  ;;  %v2870_v4 = vld [vmem:[#allocation11 + $0xa0] sm:$0xff] }
 0x5c0   :  { %v827_v6 = vadd.f32 %v1836_v5, %v2517_v34  ;;  %v2873_v5 = vld [vmem:[#allocation11 + $0x20] sm:$0xff] }
 0x5c2   :  { %2067 = vtanh.f32 %v827_v6  ;;  %v2876_v6 = vld [vmem:[#allocation11 + $0x98] sm:$0xff] }
 0x5cf   :  { %v2068_v12 = vpop.eup %2067 }
 0x5d0   :  { %v831_v13 = vsel %vm724_vm5, %v722_v8, %v2068_v12  ;;  %v2882_v8 = vld [vmem:[#allocation11 + $0x90] sm:$0xff] }
 0x5d1   :  { %v841_v14 = vrot.slane %v831_v13, %v2526_v44  ;;  %v845_v13 = vld [vmem:[#allocation5 + $0x6] sm:$0x1] }
 0x5d2   :  { %vm846_vm13 = vcmp.gt.s32.totalorder %v845_v13, 0  ;;  %v2949_v13 = vld [vmem:[#allocation11] sm:$0xff] }
 0x5d3   :  { %v2796_v15 = vsel %vm836_vm6, %v841_v14, %v2742_v49  ;;  %v2799_v16 = vsel %vm837_vm8, %v841_v14, %v2745_v52  ;;  %v844_v14 = vld [vmem:[#allocation2 + $0x6] sm:$0x1] }
 0x5d4   :  { %v872_v17 = vsel %vm870_vm9, %v2796_v15, 0.0  ;;  %v873_v18 = vsel %vm871_vm10, %v2799_v16, 0.0  ;;  %v856_v19 = vsel %vm854_vm11, %v2796_v15, 0.0  ;;  %v857_v20 = vsel %vm855_vm12, %v2799_v16, 0.0 }
 0x5d5   :  { %v874_v21 = vsel %vm247_vm7, %v873_v18, 0.0  ;;  %v858_v22 = vsel %vm247_vm7, %v857_v20, 0.0 }
 0x5d6   :  { %v875_v23 = vadd.f32 %v874_v21, %v872_v17  ;;  %v859_v24 = vadd.f32 %v858_v22, %v856_v19  ;;  %v1613_v17 = vld [vmem:[#allocation10 + $0x7] ss:$0 sm:$0xff] }
 0x5d7   :  { %vm992_vm0 = vcmp.eq.s32.totalorder %v2520_v39, %v1613_v17  ;;  %vm993_vm1 = vcmp.eq.s32.totalorder %v2523_v41, %v1613_v17 }
 0x5d8   :  { %v876_v25 = vrot.slane %v875_v23, 4  ;;  %v860_v26 = vrot.slane %v859_v24, 4 }
 0x5da   :  { %v877_v27 = vadd.f32 %v876_v25, %v875_v23  ;;  %v861_v42 = vadd.f32 %v860_v26, %v859_v24 }
 0x5dc   :  { %v878_v46 = vrot.slane %v877_v27, 2  ;;  %v862_v58 = vrot.slane %v861_v42, 2 }
 0x5de   :  { %v879_v47 = vadd.f32 %v878_v46, %v877_v27  ;;  %v863_v48 = vadd.f32 %v862_v58, %v861_v42 }
 0x5e0   :  { %v880_v59 = vrot.slane %v879_v47, 1  ;;  %v864_v1 = vrot.slane %v863_v48, 1 }
 0x5e2   :  { %v881_v49 = vadd.f32 %v880_v59, %v879_v47  ;;  %v865_v52 = vadd.f32 %v864_v1, %v863_v48 }
 0x5e4   :  { %946 = vmatprep.mubr.f32.mxu0 %v881_v49 }
 0x5e5   :  { %947 = vmatmul.mubr.f32.vlgmr.msra.gmra.mxu0 %v865_v52 }
 0x5e6   :  { %1908 = vmatpush3.msra.mxu0 %v2807_v53 }
 0x5e7   :  { %1909 = vmatprep.subr.mxu0 %v2810_v54 }
 0x5e8   :  { %1910 = vmatpush3.msra.mxu0 %v2813_v35 }
 0x5e9   :  { %1911 = vmatprep.subr.mxu0 %v2816_v55 }
 0x5ea   :  { %1912 = vmatpush3.msra.mxu0 %v2819_v56 }
 0x5eb   :  { %1913 = vmatprep.subr.mxu0 %v2822_v36 }
 0x5ec   :  { %1914 = vmatpush3.msra.mxu0 %v2825_v57 }
 0x5ed   :  { %1915 = vmatprep.subr.mxu0 %v2828_v60 }
 0x5ee   :  { %1916 = vmatpush3.msra.mxu0 %v2831_v61 }
 0x5ef   :  { %1917 = vmatprep.subr.mxu0 %v2834_v43 }
 0x5f0   :  { %1918 = vmatpush3.msra.mxu0 %v2837_v62 }
 0x5f1   :  { %1919 = vmatprep.subr.mxu0 %v2840_v63 }
 0x5f2   :  { %1920 = vmatpush3.msra.mxu0 %v2843_v45 }
 0x5f3   :  { %1921 = vmatprep.subr.mxu0 %v2846_v0 }
 0x5f4   :  { %1922 = vmatpush3.msra.mxu0 %v2849_v33 }
 0x5f5   :  { %1923 = vmatprep.subr.mxu0 %v2852_v37 }
 0x5f6   :  { %1924 = vmatpush3.msra.mxu0 %v2855_v50 }
 0x5f7   :  { %1925 = vmatprep.subr.mxu0 %v2858_v38 }
 0x5f8   :  { %1926 = vmatpush3.msra.mxu0 %v2861_v40 }
 0x5f9   :  { %1927 = vmatprep.subr.mxu0 %v2864_v51 }
 0x5fa   :  { %1928 = vmatpush3.msra.mxu0 %v2867_v3 }
 0x5fb   :  { %1929 = vmatprep.subr.mxu0 %v2870_v4 }
 0x5fc   :  { %1930 = vmatpush3.msra.mxu0 %v2873_v5 }
 0x5fd   :  { %1931 = vmatprep.subr.mxu0 %v2876_v6 }
 0x5fe   :  { %1932 = vmatpush3.msra.mxu0 %v2879_v7 }
 0x5ff   :  { %1933 = vmatprep.subr.mxu0 %v2882_v8 }
 0x600   :  { %1934 = vmatpush3.msra.mxu0 %v2454_v28  ;;  %v1611_v28 = vld [vmem:[#allocation7 + $0x6] ss:$0 sm:$0xff] }
 0x601   :  { %1935 = vmatprep.subr.mxu0 %v2458_v29  ;;  %v1612_v29 = vld [vmem:[#allocation8 + $0x7] ss:$0 sm:$0xff]  ;;  %vm958_vm14 = vcmp.eq.s32.totalorder %v2520_v39, %v1611_v28  ;;  %vm959_vm15 = vcmp.eq.s32.totalorder %v2523_v41, %v1611_v28 }
 0x602   :  { %1936 = vmatpush3.msra.mxu0 %v2462_v30  ;;  %vm976_vm2 = vcmp.eq.s32.totalorder %v2520_v39, %v1612_v29  ;;  %vm977_vm3 = vcmp.eq.s32.totalorder %v2523_v41, %v1612_v29  ;;  %v2956_v29 = vld [vmem:[%s3094_s6] sm:$0x1]  ;;  %s2273_s6 = smov [#allocation13]  }
 0x603   :  { %1937 = vmatprep.subr.mxu0 %v2466_v31  ;;  %s1581_s8 = sshll.u32 %s2273_s6, 4  ;;  %s1582_s8 = int_to_ptr.vmem [resolvable:$true] %s1581_s8 }
 0x604   :  { %1938 = vmatpush3.msra.mxu0 %v2470_v32  ;;  %s2234_s9 = scalar_lea.vmem %s1582_s8, 16  ;;  %s2238_s10 = scalar_lea.vmem %s1582_s8, 32 }
 0x605   :  { %1977 = vmatprep.subr.mxu0 %v2784_v2  ;;  %p2235_p2 = scmp.ne.s32.totalorder %s1582_s8, %s2234_s9  ;;  %p2239_p3 = scmp.lt.s32.totalorder %s1582_s8, %s1582_s8 }
 0x606   :  { %p2240_p4 = scmp.lt.s32.totalorder %s2238_s10, %s2234_s9 }
 0x608   :  { %p2241_p5 = por %p2240_p4, %p2239_p3 }
 0x60a   :  { %p2242_p6 = pnand %p2241_p5, %p2235_p2 }
 0x6a5   :  { %v1869_v9 = vpop.f32.mrf.mxu0 }
 0x6a7   :  { %v1870_v10 = vpop.f32.mrf.mxu0 }
 0x6a8   :  { %v1871_v11 = vadd.f32 %v1870_v10, %v1869_v9  ;;  %v2937_v9 = vld [vmem:[#allocation11 + $0x10] sm:$0xff]  ;;  %v2940_v10 = vld [vmem:[#allocation11 + $0x88] sm:$0xff] }
 0x6aa   :  { %v949_v12 = vadd.f32 %v1871_v11, %v2517_v34  ;;  %v2943_v11 = vld [vmem:[#allocation11 + $0x8] sm:$0xff] }
 0x6ac   :  { %2069 = vtanh.f32 %v949_v12  ;;  %v2946_v12 = vld [vmem:[#allocation11 + $0x80] sm:$0xff] }
 0x6b9   :  { %v2070_v18 = vpop.eup %2069 }
 0x6ba   :  { %v953_v30 = vsel %vm846_vm13, %v844_v14, %v2070_v18 }
 0x6bb   :  { %v963_v31 = vrot.slane %v953_v30, %v2526_v44  ;;  %v967_v30 = vld [vmem:[#allocation5 + $0x7] sm:$0x1] }
 0x6bc   :  { %vm968_vm4 = vcmp.gt.s32.totalorder %v967_v30, 0 }
 0x6bd   :  { %v2900_v32 = vsel %vm958_vm14, %v963_v31, %v2796_v15  ;;  %v2903_v34 = vsel %vm959_vm15, %v963_v31, %v2799_v16  ;;  %v966_v31 = vld [vmem:[#allocation2 + $0x7] sm:$0x1] }
 0x6be   :  { %v994_v19 = vsel %vm992_vm0, %v2900_v32, 0.0  ;;  %v995_v20 = vsel %vm993_vm1, %v2903_v34, 0.0  ;;  %v978_v21 = vsel %vm976_vm2, %v2900_v32, 0.0  ;;  %v979_v22 = vsel %vm977_vm3, %v2903_v34, 0.0 }
 0x6bf   :  { %v996_v23 = vsel %vm247_vm7, %v995_v20, 0.0  ;;  %v980_v24 = vsel %vm247_vm7, %v979_v22, 0.0  ;;  %v1616_v20 = vld [vmem:[#allocation10 + $0x8] ss:$0 sm:$0xff] }
 0x6c0   :  { %v997_v25 = vadd.f32 %v996_v23, %v994_v19  ;;  %v981_v26 = vadd.f32 %v980_v24, %v978_v21  ;;  %v1614_v19 = vld [vmem:[#allocation7 + $0x7] ss:$0 sm:$0xff]  ;;  %v1615_v21 = vld [vmem:[#allocation8 + $0x8] ss:$0 sm:$0xff]  ;;  %vm1114_vm8 = vcmp.eq.s32.totalorder %v2520_v39, %v1616_v20  ;;  %vm1115_vm9 = vcmp.eq.s32.totalorder %v2523_v41, %v1616_v20 }
 0x6c1   :  { %vm1080_vm5 = vcmp.eq.s32.totalorder %v2520_v39, %v1614_v19  ;;  %vm1081_vm6 = vcmp.eq.s32.totalorder %v2523_v41, %v1614_v19  ;;  %vm1098_vm10 = vcmp.eq.s32.totalorder %v2520_v39, %v1615_v21  ;;  %vm1099_vm11 = vcmp.eq.s32.totalorder %v2523_v41, %v1615_v21 }
 0x6c2   :  { %v998_v27 = vrot.slane %v997_v25, 4  ;;  %v982_v15 = vrot.slane %v981_v26, 4 }
 0x6c4   :  { %v999_v42 = vadd.f32 %v998_v27, %v997_v25  ;;  %v983_v46 = vadd.f32 %v982_v15, %v981_v26 }
 0x6c6   :  { %v1000_v16 = vrot.slane %v999_v42, 2  ;;  %v984_v58 = vrot.slane %v983_v46, 2 }
 0x6c8   :  { %v1001_v47 = vadd.f32 %v1000_v16, %v999_v42  ;;  %v985_v48 = vadd.f32 %v984_v58, %v983_v46 }
 0x6ca   :  { %v1002_v59 = vrot.slane %v1001_v47, 1  ;;  %v986_v1 = vrot.slane %v985_v48, 1 }
 0x6cc   :  { %v1003_v49 = vadd.f32 %v1002_v59, %v1001_v47  ;;  %v987_v52 = vadd.f32 %v986_v1, %v985_v48 }
 0x6ce   :  { %1068 = vmatprep.mubr.f32.mxu1 %v1003_v49 }
 0x6cf   :  { %1069 = vmatmul.mubr.f32.vlgmr.msra.gmra.mxu1 %v987_v52 }
 0x6d0   :  { %1943 = vmatpush3.msra.mxu1 %v2807_v53 }
 0x6d1   :  { %1944 = vmatprep.subr.mxu1 %v2810_v54 }
 0x6d2   :  { %1945 = vmatpush3.msra.mxu1 %v2813_v35 }
 0x6d3   :  { %1946 = vmatprep.subr.mxu1 %v2816_v55 }
 0x6d4   :  { %1947 = vmatpush3.msra.mxu1 %v2819_v56 }
 0x6d5   :  { %1948 = vmatprep.subr.mxu1 %v2822_v36 }
 0x6d6   :  { %1949 = vmatpush3.msra.mxu1 %v2825_v57 }
 0x6d7   :  { %1950 = vmatprep.subr.mxu1 %v2828_v60 }
 0x6d8   :  { %1951 = vmatpush3.msra.mxu1 %v2831_v61 }
 0x6d9   :  { %1952 = vmatprep.subr.mxu1 %v2834_v43 }
 0x6da   :  { %1953 = vmatpush3.msra.mxu1 %v2837_v62 }
 0x6db   :  { %1954 = vmatprep.subr.mxu1 %v2840_v63 }
 0x6dc   :  { %1955 = vmatpush3.msra.mxu1 %v2843_v45 }
 0x6dd   :  { %1956 = vmatprep.subr.mxu1 %v2846_v0 }
 0x6de   :  { %1957 = vmatpush3.msra.mxu1 %v2849_v33 }
 0x6df   :  { %1958 = vmatprep.subr.mxu1 %v2852_v37 }
 0x6e0   :  { %1959 = vmatpush3.msra.mxu1 %v2855_v50 }
 0x6e1   :  { %1960 = vmatprep.subr.mxu1 %v2858_v38 }
 0x6e2   :  { %1961 = vmatpush3.msra.mxu1 %v2861_v40 }
 0x6e3   :  { %1962 = vmatprep.subr.mxu1 %v2864_v51 }
 0x6e4   :  { %1963 = vmatpush3.msra.mxu1 %v2867_v3 }
 0x6e5   :  { %1964 = vmatprep.subr.mxu1 %v2870_v4 }
 0x6e6   :  { %1965 = vmatpush3.msra.mxu1 %v2873_v5 }
 0x6e7   :  { %1966 = vmatprep.subr.mxu1 %v2876_v6 }
 0x6e8   :  { %1967 = vmatpush3.msra.mxu1 %v2879_v7 }
 0x6e9   :  { %1968 = vmatprep.subr.mxu1 %v2882_v8 }
 0x6ea   :  { %1969 = vmatpush3.msra.mxu1 %v2937_v9 }
 0x6eb   :  { %1970 = vmatprep.subr.mxu1 %v2940_v10 }
 0x6ec   :  { %1971 = vmatpush3.msra.mxu1 %v2943_v11 }
 0x6ed   :  { %1972 = vmatprep.subr.mxu1 %v2946_v12 }
 0x6ee   :  { %1973 = vmatpush3.msra.mxu1 %v2949_v13 }
 0x6ef   :  { %2012 = vmatprep.subr.mxu1 %v2784_v2 }
 0x78f   :  { %v1904_v14 = vpop.f32.mrf.mxu1 }
 0x791   :  { %v1905_v28 = vpop.f32.mrf.mxu1 }
 0x792   :  { %v1906_v17 = vadd.f32 %v1905_v28, %v1904_v14 }
 0x794   :  { %v1071_v18 = vadd.f32 %v2956_v29, %v1906_v17 }
 0x796   :  { %2071 = vtanh.f32 %v1071_v18 }
 0x7a3   :  { %v2072_v22 = vpop.eup %2071 }
 0x7a4   :  { %v1075_v23 = vsel %vm968_vm4, %v966_v31, %v2072_v22  ;;  %v1089_v22 = vld [vmem:[#allocation5 + $0x8] sm:$0x1] }
 0x7a5   :  { %v1085_v2 = vrot.slane %v1075_v23, %v2526_v44  ;;  %v1088_v23 = vld [vmem:[#allocation2 + $0x8] sm:$0x1]  ;;  %vm1090_vm12 = vcmp.gt.s32.totalorder %v1089_v22, 0 }
 0x7a7   :  { %v2967_v24 = vsel %vm1080_vm5, %v1085_v2, %v2900_v32  ;;  %v2970_v25 = vsel %vm1081_vm6, %v1085_v2, %v2903_v34  ;;  %v1617_v2 = vld [vmem:[#allocation7 + $0x8] ss:$0 sm:$0xff] }
 0x7a8   :  { %v1116_v26 = vsel %vm1114_vm8, %v2967_v24, 0.0  ;;  %v1117_v27 = vsel %vm1115_vm9, %v2970_v25, 0.0  ;;  %v1100_v15 = vsel %vm1098_vm10, %v2967_v24, 0.0  ;;  %v1101_v42 = vsel %vm1099_vm11, %v2970_v25, 0.0 }
 0x7a9   :  { %v1118_v46 = vsel %vm247_vm7, %v1117_v27, 0.0  ;;  %v1102_v16 = vsel %vm247_vm7, %v1101_v42, 0.0  ;;  %v1618_v27 = vld [vmem:[#allocation8 + $0x9] ss:$0 sm:$0xff]  ;;  %vm1202_vm13 = vcmp.eq.s32.totalorder %v2520_v39, %v1617_v2  ;;  %vm1203_vm14 = vcmp.eq.s32.totalorder %v2523_v41, %v1617_v2 }
 0x7aa   :  { %v1119_v58 = vadd.f32 %v1118_v46, %v1116_v26  ;;  %v1103_v47 = vadd.f32 %v1102_v16, %v1100_v15  ;;  %v1619_v26 = vld [vmem:[#allocation10 + $0x9] ss:$0 sm:$0xff]  ;;  %vm1220_vm1 = vcmp.eq.s32.totalorder %v2520_v39, %v1618_v27  ;;  %vm1221_vm2 = vcmp.eq.s32.totalorder %v2523_v41, %v1618_v27 }
 0x7ab   :  { %vm1236_vm15 = vcmp.eq.s32.totalorder %v2520_v39, %v1619_v26  ;;  %vm1237_vm0 = vcmp.eq.s32.totalorder %v2523_v41, %v1619_v26 }
 0x7ac   :  { %v1120_v48 = vrot.slane %v1119_v58, 4  ;;  %v1104_v32 = vrot.slane %v1103_v47, 4 }
 0x7ae   :  { %v1121_v59 = vadd.f32 %v1120_v48, %v1119_v58  ;;  %v1105_v1 = vadd.f32 %v1104_v32, %v1103_v47 }
 0x7b0   :  { %v1122_v34 = vrot.slane %v1121_v59, 2  ;;  %v1106_v49 = vrot.slane %v1105_v1, 2 }
 0x7b2   :  { %v1123_v52 = vadd.f32 %v1122_v34, %v1121_v59  ;;  %v1107_v14 = vadd.f32 %v1106_v49, %v1105_v1 }
 0x7b4   :  { %v1124_v28 = vrot.slane %v1123_v52, 1  ;;  %v1108_v17 = vrot.slane %v1107_v14, 1 }
 0x7b6   :  { %v1125_v18 = vadd.f32 %v1124_v28, %v1123_v52  ;;  %v1109_v30 = vadd.f32 %v1108_v17, %v1107_v14 }
 0x7b8   :  { %1190 = vmatprep.mubr.f32.mxu0 %v1125_v18 }
 0x7b9   :  { %1191 = vmatmul.mubr.f32.vlgmr.msra.gmra.mxu0 %v1109_v30 }
 0x7ba   :  { %1978 = vmatpush3.msra.mxu0 %v2807_v53 }
 0x7bb   :  { %1979 = vmatprep.subr.mxu0 %v2810_v54 }
 0x7bc   :  { %1980 = vmatpush3.msra.mxu0 %v2813_v35 }
 0x7bd   :  { %1981 = vmatprep.subr.mxu0 %v2816_v55 }
 0x7be   :  { %1982 = vmatpush3.msra.mxu0 %v2819_v56 }
 0x7bf   :  { %1983 = vmatprep.subr.mxu0 %v2822_v36 }
 0x7c0   :  { %1984 = vmatpush3.msra.mxu0 %v2825_v57 }
 0x7c1   :  { %1985 = vmatprep.subr.mxu0 %v2828_v60 }
 0x7c2   :  { %1986 = vmatpush3.msra.mxu0 %v2831_v61 }
 0x7c3   :  { %1987 = vmatprep.subr.mxu0 %v2834_v43 }
 0x7c4   :  { %1988 = vmatpush3.msra.mxu0 %v2837_v62 }
 0x7c5   :  { %1989 = vmatprep.subr.mxu0 %v2840_v63 }
 0x7c6   :  { %1990 = vmatpush3.msra.mxu0 %v2843_v45 }
 0x7c7   :  { %1991 = vmatprep.subr.mxu0 %v2846_v0 }
 0x7c8   :  { %1992 = vmatpush3.msra.mxu0 %v2849_v33 }
 0x7c9   :  { %1993 = vmatprep.subr.mxu0 %v2852_v37 }
 0x7ca   :  { %1994 = vmatpush3.msra.mxu0 %v2855_v50 }
 0x7cb   :  { %1995 = vmatprep.subr.mxu0 %v2858_v38 }
 0x7cc   :  { %1996 = vmatpush3.msra.mxu0 %v2861_v40 }
 0x7cd   :  { %1997 = vmatprep.subr.mxu0 %v2864_v51 }
 0x7ce   :  { %1998 = vmatpush3.msra.mxu0 %v2867_v3 }
 0x7cf   :  { %1999 = vmatprep.subr.mxu0 %v2870_v4 }
 0x7d0   :  { %2000 = vmatpush3.msra.mxu0 %v2873_v5 }
 0x7d1   :  { %2001 = vmatprep.subr.mxu0 %v2876_v6 }
 0x7d2   :  { %2002 = vmatpush3.msra.mxu0 %v2879_v7 }
 0x7d3   :  { %2003 = vmatprep.subr.mxu0 %v2882_v8 }
 0x7d4   :  { %2004 = vmatpush3.msra.mxu0 %v2937_v9 }
 0x7d5   :  { %2005 = vmatprep.subr.mxu0 %v2940_v10 }
 0x7d6   :  { %2006 = vmatpush3.msra.mxu0 %v2943_v11 }
 0x7d7   :  { %2007 = vmatprep.subr.mxu0 %v2946_v12 }
 0x7d8   :  { %2008 = vmatpush3.msra.mxu0 %v2949_v13 }
 0x879   :  { %v1939_v31 = vpop.f32.mrf.mxu0 }
 0x87b   :  { %v1940_v19 = vpop.f32.mrf.mxu0 }
 0x87c   :  { %v1941_v20 = vadd.f32 %v1940_v19, %v1939_v31 }
 0x87e   :  { %v1193_v21 = vadd.f32 %v2956_v29, %v1941_v20 }
 0x880   :  { %2073 = vtanh.f32 %v1193_v21 }
 0x88d   :  { %v2074_v15 = vpop.eup %2073 }
 0x88e   :  { %v1197_v42 = vsel %vm1090_vm12, %v1088_v23, %v2074_v15 }
 0x88f   :  { %v1207_v46 = vrot.slane %v1197_v42, %v2526_v44 }
 0x891   :  { %v3018_v16 = vsel %vm1202_vm13, %v1207_v46, %v2967_v24  ;;  %v3021_v58 = vsel %vm1203_vm14, %v1207_v46, %v2970_v25 }
 0x892   :  { %v1238_v47 = vsel %vm1236_vm15, %v3018_v16, 0.0  ;;  %v1239_v48 = vsel %vm1237_vm0, %v3021_v58, 0.0  ;;  %v1222_v32 = vsel %vm1220_vm1, %v3018_v16, 0.0  ;;  %v1223_v59 = vsel %vm1221_vm2, %v3021_v58, 0.0 }
 0x893   :  { %v1240_v1 = vsel %vm247_vm7, %v1239_v48, 0.0  ;;  %v1224_v34 = vsel %vm247_vm7, %v1223_v59, 0.0  ;;  %v1624_v48 = vld [vmem:[#allocation8 + $0xb] ss:$0 sm:$0xff] }
 0x894   :  { %v1241_v49 = vadd.f32 %v1240_v1, %v1238_v47  ;;  %v1225_v52 = vadd.f32 %v1224_v34, %v1222_v32  ;;  %v1623_v47 = vld [vmem:[#allocation7 + $0xa] ss:$0 sm:$0xff]  ;;  %v1625_v32 = vld [vmem:[#allocation10 + $0xb] ss:$0 sm:$0xff]  ;;  %vm1465_vm14 = vcmp.eq.s32.totalorder %v2523_v41, %v1624_v48  ;;  %vm1464_vm1 = vcmp.eq.s32.totalorder %v2520_v39, %v1624_v48 }
 0x895   :  { %vm1446_vm12 = vcmp.eq.s32.totalorder %v2520_v39, %v1623_v47  ;;  %vm1447_vm13 = vcmp.eq.s32.totalorder %v2523_v41, %v1623_v47  ;;  %vm1480_vm15 = vcmp.eq.s32.totalorder %v2520_v39, %v1625_v32  ;;  %vm1481_vm0 = vcmp.eq.s32.totalorder %v2523_v41, %v1625_v32 }
 0x896   :  { %v1242_v14 = vrot.slane %v1241_v49, 4  ;;  %v1226_v24 = vrot.slane %v1225_v52, 4 }
 0x898   :  { %v1243_v28 = vadd.f32 %v1242_v14, %v1241_v49  ;;  %v1227_v17 = vadd.f32 %v1226_v24, %v1225_v52 }
 0x89a   :  { %v1244_v25 = vrot.slane %v1243_v28, 2  ;;  %v1228_v18 = vrot.slane %v1227_v17, 2 }
 0x89c   :  { %v1245_v30 = vadd.f32 %v1244_v25, %v1243_v28  ;;  %v1229_v31 = vadd.f32 %v1228_v18, %v1227_v17 }
 0x89e   :  { %v1246_v19 = vrot.slane %v1245_v30, 1  ;;  %v1230_v20 = vrot.slane %v1229_v31, 1 }
 0x8a0   :  { %v1247_v21 = vadd.f32 %v1246_v19, %v1245_v30  ;;  %v1231_v22 = vadd.f32 %v1230_v20, %v1229_v31 }
 0x8a2   :  { %1312 = vmatprep.mubr.f32.mxu1 %v1247_v21 }
 0x8a3   :  { %1313 = vmatmul.mubr.f32.vlgmr.msra.gmra.mxu1 %v1231_v22 }
 0x8a4   :  { %2013 = vmatpush3.msra.mxu1 %v2807_v53 }
 0x8a5   :  { %2014 = vmatprep.subr.mxu1 %v2810_v54 }
 0x8a6   :  { %2015 = vmatpush3.msra.mxu1 %v2813_v35 }
 0x8a7   :  { %2016 = vmatprep.subr.mxu1 %v2816_v55 }
 0x8a8   :  { %2017 = vmatpush3.msra.mxu1 %v2819_v56  ;;  %v1211_v56 = vld [vmem:[#allocation5 + $0x9] sm:$0x1] }
 0x8a9   :  { %2018 = vmatprep.subr.mxu1 %v2822_v36  ;;  %v1210_v36 = vld [vmem:[#allocation2 + $0x9] sm:$0x1]  ;;  %vm1212_vm3 = vcmp.gt.s32.totalorder %v1211_v56, 0 }
 0x8aa   :  { %2019 = vmatpush3.msra.mxu1 %v2825_v57  ;;  %v1620_v57 = vld [vmem:[#allocation7 + $0x9] ss:$0 sm:$0xff] }
 0x8ab   :  { %2020 = vmatprep.subr.mxu1 %v2828_v60  ;;  %v1622_v60 = vld [vmem:[#allocation10 + $0xa] ss:$0 sm:$0xff]  ;;  %vm1324_vm4 = vcmp.eq.s32.totalorder %v2520_v39, %v1620_v57  ;;  %vm1325_vm5 = vcmp.eq.s32.totalorder %v2523_v41, %v1620_v57 }
 0x8ac   :  { %2021 = vmatpush3.msra.mxu1 %v2831_v61  ;;  %v1621_v61 = vld [vmem:[#allocation8 + $0xa] ss:$0 sm:$0xff]  ;;  %vm1358_vm6 = vcmp.eq.s32.totalorder %v2520_v39, %v1622_v60  ;;  %vm1359_vm8 = vcmp.eq.s32.totalorder %v2523_v41, %v1622_v60 }
 0x8ad   :  { %2022 = vmatprep.subr.mxu1 %v2834_v43  ;;  %vm1342_vm9 = vcmp.eq.s32.totalorder %v2520_v39, %v1621_v61  ;;  %vm1343_vm10 = vcmp.eq.s32.totalorder %v2523_v41, %v1621_v61 }
 0x8ae   :  { %2023 = vmatpush3.msra.mxu1 %v2837_v62 }
 0x8af   :  { %2024 = vmatprep.subr.mxu1 %v2840_v63 }
 0x8b0   :  { %2025 = vmatpush3.msra.mxu1 %v2843_v45 }
 0x8b1   :  { %2026 = vmatprep.subr.mxu1 %v2846_v0 }
 0x8b2   :  { %2027 = vmatpush3.msra.mxu1 %v2849_v33 }
 0x8b3   :  { %2028 = vmatprep.subr.mxu1 %v2852_v37 }
 0x8b4   :  { %2029 = vmatpush3.msra.mxu1 %v2855_v50 }
 0x8b5   :  { %2030 = vmatprep.subr.mxu1 %v2858_v38 }
 0x8b6   :  { %2031 = vmatpush3.msra.mxu1 %v2861_v40 }
 0x8b7   :  { %2032 = vmatprep.subr.mxu1 %v2864_v51 }
 0x8b8   :  { %2033 = vmatpush3.msra.mxu1 %v2867_v3 }
 0x8b9   :  { %2034 = vmatprep.subr.mxu1 %v2870_v4 }
 0x8ba   :  { %2035 = vmatpush3.msra.mxu1 %v2873_v5 }
 0x8bb   :  { %2036 = vmatprep.subr.mxu1 %v2876_v6 }
 0x8bc   :  { %2037 = vmatpush3.msra.mxu1 %v2879_v7 }
 0x8bd   :  { %2038 = vmatprep.subr.mxu1 %v2882_v8 }
 0x8be   :  { %2039 = vmatpush3.msra.mxu1 %v2937_v9 }
 0x8bf   :  { %2040 = vmatprep.subr.mxu1 %v2940_v10 }
 0x8c0   :  { %2041 = vmatpush3.msra.mxu1 %v2943_v11 }
 0x8c1   :  { %2042 = vmatprep.subr.mxu1 %v2946_v12 }
 0x8c2   :  { %2043 = vmatpush3.msra.mxu1 %v2949_v13 }
 0x963   :  { %v1974_v53 = vpop.f32.mrf.mxu1 }
 0x965   :  { %v1975_v54 = vpop.f32.mrf.mxu1 }
 0x966   :  { %v1976_v35 = vadd.f32 %v1975_v54, %v1974_v53 }
 0x968   :  { %v1315_v55 = vadd.f32 %v2956_v29, %v1976_v35 }
 0x96a   :  { %2075 = vtanh.f32 %v1315_v55 }
 0x977   :  { %v2076_v43 = vpop.eup %2075 }
 0x978   :  { %v1319_v62 = vsel %vm1212_vm3, %v1210_v36, %v2076_v43 }
 0x979   :  { %v1329_v63 = vrot.slane %v1319_v62, %v2526_v44 }
 0x97b   :  { %v1330_v45 = vsel %vm1324_vm4, %v1329_v63, %v3018_v16  ;;  %v1331_v0 = vsel %vm1325_vm5, %v1329_v63, %v3021_v58  ;;  %v1333_v16 = vld [vmem:[#allocation5 + $0xa] sm:$0x1]  ;;  %v1332_v58 = vld [vmem:[#allocation2 + $0xa] sm:$0x1]  ;;  %v1455_v63 = vld [vmem:[#allocation5 + $0xb] sm:$0x1] }
 0x97c   :  { %v1360_v33 = vsel %vm1358_vm6, %v1330_v45, 0.0  ;;  %v1361_v37 = vsel %vm1359_vm8, %v1331_v0, 0.0  ;;  %v1344_v50 = vsel %vm1342_vm9, %v1330_v45, 0.0  ;;  %v1345_v38 = vsel %vm1343_vm10, %v1331_v0, 0.0 }
 0x97d   :  { %v1362_v40 = vsel %vm247_vm7, %v1361_v37, 0.0  ;;  %v1346_v51 = vsel %vm247_vm7, %v1345_v38, 0.0  ;;  %vm1334_vm11 = vcmp.gt.s32.totalorder %v1333_v16, 0 }
 0x97e   :  { %v1363_v3 = vadd.f32 %v1362_v40, %v1360_v33  ;;  %v1347_v4 = vadd.f32 %v1346_v51, %v1344_v50 }
 0x980   :  { %v1364_v5 = vrot.slane %v1363_v3, 4  ;;  %v1348_v6 = vrot.slane %v1347_v4, 4 }
 0x982   :  { %v1365_v7 = vadd.f32 %v1364_v5, %v1363_v3  ;;  %v1349_v8 = vadd.f32 %v1348_v6, %v1347_v4 }
 0x984   :  { %v1366_v9 = vrot.slane %v1365_v7, 2  ;;  %v1350_v10 = vrot.slane %v1349_v8, 2 }
 0x986   :  { %v1367_v11 = vadd.f32 %v1366_v9, %v1365_v7  ;;  %v1351_v12 = vadd.f32 %v1350_v10, %v1349_v8 }
 0x988   :  { %v1368_v13 = vrot.slane %v1367_v11, 1  ;;  %v1352_v23 = vrot.slane %v1351_v12, 1 }
 0x98a   :  { %v1369_v2 = vadd.f32 %v1368_v13, %v1367_v11  ;;  %v1353_v26 = vadd.f32 %v1352_v23, %v1351_v12 }
 0x98c   :  { %1434 = vmatprep.mubr.f32.mxu0 %v1369_v2 }
 0x98d   :  { %1435 = vmatmul.mubr.f32.vlgmr.msra.gmra.mxu0 %v1353_v26 }
 0xa4d   :  { %v2009_v27 = vpop.f32.mrf.mxu0 }
 0xa4f   :  { %v2010_v15 = vpop.f32.mrf.mxu0 }
 0xa50   :  { %v2011_v42 = vadd.f32 %v2010_v15, %v2009_v27 }
 0xa52   :  { %v1437_v46 = vadd.f32 %v2956_v29, %v2011_v42 }
 0xa54   :  { %2077 = vtanh.f32 %v1437_v46 }
 0xa61   :  { %v2078_v59 = vpop.eup %2077 }
 0xa62   :  { %v1441_v1 = vsel %vm1334_vm11, %v1332_v58, %v2078_v59 }
 0xa63   :  { %v1451_v34 = vrot.slane %v1441_v1, %v2526_v44 }
 0xa65   :  { %v1452_v49 = vsel %vm1446_vm12, %v1451_v34, %v1330_v45  ;;  %v1453_v52 = vsel %vm1447_vm13, %v1451_v34, %v1331_v0  ;;  %v1454_v45 = vld [vmem:[#allocation2 + $0xb] sm:$0x1] }
 0xa66   :  { %v1467_v14 = vsel %vm1465_vm14, %v1453_v52, 0.0  ;;  %v1482_v24 = vsel %vm1480_vm15, %v1452_v49, 0.0  ;;  %v1483_v28 = vsel %vm1481_vm0, %v1453_v52, 0.0  ;;  %v1466_v17 = vsel %vm1464_vm1, %v1452_v49, 0.0  ;;  %v1626_v0 = vld [vmem:[#allocation7 + $0xb] ss:$0 sm:$0xff] }
 0xa67   :  { %v1484_v25 = vsel %vm247_vm7, %v1483_v28, 0.0  ;;  %v1468_v18 = vsel %vm247_vm7, %v1467_v14, 0.0  ;;  %vm1456_vm7 = vcmp.gt.s32.totalorder %v1455_v63, 0  ;;  %vm1568_vm2 = vcmp.eq.s32.totalorder %v2520_v39, %v1626_v0 }
 0xa68   :  { %v1485_v30 = vadd.f32 %v1484_v25, %v1482_v24  ;;  %v1469_v31 = vadd.f32 %v1468_v18, %v1466_v17 }
 0xa6a   :  { %v1486_v19 = vrot.slane %v1485_v30, 4  ;;  %v1470_v20 = vrot.slane %v1469_v31, 4 }
 0xa6c   :  { %v1487_v21 = vadd.f32 %v1486_v19, %v1485_v30  ;;  %v1471_v22 = vadd.f32 %v1470_v20, %v1469_v31 }
 0xa6e   :  { %v1488_v53 = vrot.slane %v1487_v21, 2  ;;  %v1472_v41 = vrot.slane %v1471_v22, 2 }
 0xa70   :  { %v1489_v54 = vadd.f32 %v1488_v53, %v1487_v21  ;;  %v1473_v35 = vadd.f32 %v1472_v41, %v1471_v22 }
 0xa72   :  { %v1490_v55 = vrot.slane %v1489_v54, 1  ;;  %v1474_v56 = vrot.slane %v1473_v35, 1 }
 0xa74   :  { %v1491_v36 = vadd.f32 %v1490_v55, %v1489_v54  ;;  %v1475_v57 = vadd.f32 %v1474_v56, %v1473_v35 }
 0xa76   :  { %1556 = vmatprep.mubr.f32.mxu1 %v1491_v36 }
 0xa77   :  { %1557 = vmatmul.mubr.f32.vlgmr.msra.gmra.mxu1 %v1475_v57 }
 0xb37   :  { %v2044_v60 = vpop.f32.mrf.mxu1 }
 0xb39   :  { %v2045_v61 = vpop.f32.mrf.mxu1 }
 0xb3a   :  { %v2046_v43 = vadd.f32 %v2045_v61, %v2044_v60 }
 0xb3c   :  { %v1559_v62 = vadd.f32 %v2956_v29, %v2046_v43 }
 0xb3e   :  { %2079 = vtanh.f32 %v1559_v62 }
 0xb4b   :  { %v2080_v33 = vpop.eup %2079 }
 0xb4c   :  { %v1563_v37 = vsel %vm1456_vm7, %v1454_v45, %v2080_v33 }
 0xb4d   :  { %v1572_v50 = vrot.slane %v1563_v37, %v2526_v44 }
 0xb4f   :  { %v1573_v38 = vsel %vm1568_vm2, %v1572_v50, %v1452_v49 }
 0xb50   :  { %1574 = vst [vmem:[#allocation13] sm:$0x1] %v1573_v38 }
 0xb51   :  { %2245 = shalt.err (!%p2242_p6)
}
 0xb52   :  { %1584 = dma.vmem_to_hbm [thread:$0]  %s1582_s8, 16, %s3095_s7, [#allocation4]  }
 0xb53   :  { %2262 = dma.done.wait [#allocation4], 16  }
 0xb54   :  { %2263 = vsyncadd [#allocation4], 4294967280 }
 0xb55   :  { %1588 = vsyncpa [#allocation3], 1 }
 0xb56   :  { %1589 = vsyncpa [#allocation6], 1 }
 0xb57   :  { %1590 = vsyncpa [#allocation9], 1 }
 0xb58   :  { %1591 = vsyncpa [#allocation12], 1 }
 0xb59   :  { %1592 = vsyncpa [#allocation4], 1 }

</bundles_post_ra>
